<compile_context>
chip_gen: v7x
topology: tpu7x:2x2x1
jax: 0.10.0
libtpu: 0.0.40
codegen_flags: <defaults>
</compile_context>

<pallas_src>
import jax
import jax.numpy as jnp
from jax.experimental import pallas as pl
from jax.experimental.pallas import tpu as pltpu

NEG_INF = -1e30  # padded-class logit; exp(NEG_INF - max) == 0 exactly in f32


def _round_up(x, m):
    return ((x + m - 1) // m) * m


def dn_classifier_kernel(x_ref, w1_ref, b1_ref, w2_ref, b2_ref, w3_ref, b3_ref, o_ref):
    x = x_ref[...]  # (TB, IN) bf16

    # fc1 + ReLU   (dropout = identity in eval mode)
    h1 = jnp.dot(x, w1_ref[...], preferred_element_type=jnp.float32) + b1_ref[...]
    h1 = jnp.maximum(h1, 0.0).astype(jnp.bfloat16)

    # fc2 + ReLU   (dropout = identity in eval mode)
    h2 = jnp.dot(h1, w2_ref[...], preferred_element_type=jnp.float32) + b2_ref[...]
    h2 = jnp.maximum(h2, 0.0).astype(jnp.bfloat16)

    # fc3 (class-padded to 128 lanes) + log_softmax over the class axis.
    # Padded classes have bias = -1e30 -> exp underflows to exactly 0, so the
    # log-sum-exp over the 10 real classes is unchanged.
    z = jnp.dot(h2, w3_ref[...], preferred_element_type=jnp.float32) + b3_ref[...]
    m = jnp.max(z, axis=-1, keepdims=True)
    s = z - m
    lse = jnp.log(jnp.sum(jnp.exp(s), axis=-1, keepdims=True))
    o_ref[...] = (s - lse).astype(o_ref.dtype)


def dn_classifier_forward(x, w1, b1, w2, b2, w3, b3, *, block_b=256):
    """x: [B, in_features] f32; w_i pre-transposed to [in_i, out_i]; b_i: [1, out_i] f32."""
    B, in_f = x.shape
    h1_f = w1.shape[1]
    h2_f = w2.shape[1]
    out_f = w3.shape[1]

    # --- lane-dense class padding (10 -> 128) ---
    out_pad = max(128, _round_up(out_f, 128))
    w3p = jnp.zeros((h2_f, out_pad), jnp.float32).at[:, :out_f].set(w3)
    b3p = jnp.full((1, out_pad), NEG_INF, jnp.float32).at[:, :out_f].set(b3)

    # --- bf16 MXU inputs (biases stay f32) ---
    xb = x.astype(jnp.bfloat16)
    w1b = w1.astype(jnp.bfloat16)
    w2b = w2.astype(jnp.bfloat16)
    w3b = w3p.astype(jnp.bfloat16)
    b1f = b1.astype(jnp.float32)
    b2f = b2.astype(jnp.float32)

    # --- batch tiling: TB rows per grid step, batch padded to a multiple ---
    tb = min(block_b, _round_up(B, 8))
    bp = _round_up(B, tb)
    if bp != B:
        xb = jnp.zeros((bp, in_f), jnp.bfloat16).at[:B].set(xb)
    grid = (bp // tb,)

    def resident(arr):  # weights/biases: full-array block, DMA'd once, stays in VMEM
        return pl.BlockSpec(arr.shape, lambda i: tuple(0 for _ in arr.shape))

    cost = pl.CostEstimate(
        flops=2 * bp * (in_f * h1_f + h1_f * h2_f + h2_f * out_pad),
        transcendentals=bp * (out_pad + 1),  # exp over padded classes + log
        bytes_accessed=(xb.nbytes + w1b.nbytes + w2b.nbytes + w3b.nbytes
                        + b1f.nbytes + b2f.nbytes + b3p.nbytes
                        + bp * out_pad * 4),
    )

    out = pl.pallas_call(
        dn_classifier_kernel,
        out_shape=jax.ShapeDtypeStruct((bp, out_pad), jnp.float32),
        grid=grid,
        in_specs=[
            pl.BlockSpec((tb, in_f), lambda i: (i, 0)),  # x: tiled over batch
            resident(w1b), resident(b1f),
            resident(w2b), resident(b2f),
            resident(w3b), resident(b3p),
        ],
        out_specs=pl.BlockSpec((tb, out_pad), lambda i: (i, 0)),
        compiler_params=pltpu.CompilerParams(dimension_semantics=("parallel",)),
        cost_estimate=cost,
    )(xb, w1b, b1f, w2b, b2f, w3b, b3p)

    return out[:B, :out_f]


def make_params(key, in_features, hidden_units, out_features, mean, std, bias):
    """Deterministic init mimicking torch.nn.init.normal_(weight, mean, std) /
    constant_(bias, bias_val). Weights returned already transposed to [in, out]."""
    dims = [in_features, hidden_units[0], hidden_units[1], out_features]
    params = []
    for i in range(3):
        key, sub = jax.random.split(key)
        w = jax.random.normal(sub, (dims[i], dims[i + 1]), dtype=jnp.float32) * std + mean
        b = jnp.full((1, dims[i + 1]), bias, dtype=jnp.float32)
        params += [w, b]
    return params


def reference_forward(x, w1, b1, w2, b2, w3, b3):
    # Mirrors the kernel's mixed precision: bf16 MXU inputs, f32 accumulation,
    # f32 bias/ReLU/log_softmax.
    xb = x.astype(jnp.bfloat16)
    h1 = jnp.maximum(
        jnp.dot(xb, w1.astype(jnp.bfloat16), preferred_element_type=jnp.float32) + b1, 0.0
    ).astype(jnp.bfloat16)
    h2 = jnp.maximum(
        jnp.dot(h1, w2.astype(jnp.bfloat16), preferred_element_type=jnp.float32) + b2, 0.0
    ).astype(jnp.bfloat16)
    z = jnp.dot(h2, w3.astype(jnp.bfloat16), preferred_element_type=jnp.float32) + b3
    return jax.nn.log_softmax(z, axis=1)


if __name__ == "__main__":
    # net = {'in_features': 128, 'out_features': 10}
    # hp  = {'hidden_units': (64, 32), 'init_params': (0.0, 0.02, 0.01), 'p_dropout': 0.2}
    B, in_features, out_features = 512, 128, 10   # batched M so the MXU rows are filled
    hidden_units = (64, 32)
    mean, std, bias_val = 0.0, 0.02, 0.01

    key = jax.random.PRNGKey(0)
    key, xkey = jax.random.split(key)
    x = jax.random.normal(xkey, (B, in_features), dtype=jnp.float32)

    w1, b1, w2, b2, w3, b3 = make_params(
        key, in_features, hidden_units, out_features, mean, std, bias_val
    )

    out = dn_classifier_forward(x, w1, b1, w2, b2, w3, b3, block_b=256)
    out = jax.block_until_ready(out)

    ref = reference_forward(x, w1, b1, w2, b2, w3, b3)
    assert out.shape == (B, out_features)
    assert jnp.allclose(out, ref, atol=2e-3, rtol=2e-3), "mismatch vs JAX reference"

    print("KERNEL_OK")
</pallas_src>

<mosaic_0001>
module attributes {stable_mosaic.version = 11 : i64} {
  func.func @dn_classifier_kernel(%arg0: i32, %arg1: memref<256x128xbf16, #tpu.memory_space<vmem>>, %arg2: memref<128x64xbf16, #tpu.memory_space<vmem>>, %arg3: memref<1x64xf32, #tpu.memory_space<vmem>>, %arg4: memref<64x32xbf16, #tpu.memory_space<vmem>>, %arg5: memref<1x32xf32, #tpu.memory_space<vmem>>, %arg6: memref<32x128xbf16, #tpu.memory_space<vmem>>, %arg7: memref<1x128xf32, #tpu.memory_space<vmem>>, %arg8: memref<256x128xf32, #tpu.memory_space<vmem>>) attributes {dimension_semantics = [#tpu.dimension_semantics<parallel>], iteration_bounds = array<i64: 2>, scalar_prefetch = 0 : i64, scratch_operands = 0 : i64, tpu.core_type = #tpu.core_type<tc>, window_params = [{transform_indices = @transform_0, window_bounds = array<i64: 256, 128>}, {pipeline_mode = #tpu.pipeline_mode<synchronous>, transform_indices = @transform_1, window_bounds = array<i64: 128, 64>}, {pipeline_mode = #tpu.pipeline_mode<synchronous>, transform_indices = @transform_2, window_bounds = array<i64: 1, 64>}, {pipeline_mode = #tpu.pipeline_mode<synchronous>, transform_indices = @transform_3, window_bounds = array<i64: 64, 32>}, {pipeline_mode = #tpu.pipeline_mode<synchronous>, transform_indices = @transform_4, window_bounds = array<i64: 1, 32>}, {pipeline_mode = #tpu.pipeline_mode<synchronous>, transform_indices = @transform_5, window_bounds = array<i64: 32, 128>}, {pipeline_mode = #tpu.pipeline_mode<synchronous>, transform_indices = @transform_6, window_bounds = array<i64: 1, 128>}, {transform_indices = @transform_7, window_bounds = array<i64: 256, 128>}]} {
    %c0 = arith.constant 0 : index
    %c0_0 = arith.constant 0 : index
    %0 = vector.load %arg1[%c0, %c0_0] : memref<256x128xbf16, #tpu.memory_space<vmem>>, vector<256x128xbf16>
    %c0_1 = arith.constant 0 : index
    %c0_2 = arith.constant 0 : index
    %1 = vector.load %arg2[%c0_1, %c0_2] : memref<128x64xbf16, #tpu.memory_space<vmem>>, vector<128x64xbf16>
    %cst = arith.constant dense<0.000000e+00> : vector<256x64xf32>
    %2 = tpu.matmul %0, %1, %cst {dimension_numbers = #tpu.dot_dimension_numbers<[1], [0], [0], [1], [0, 0, 1, 1], [], []>} : vector<256x128xbf16>, vector<128x64xbf16>, vector<256x64xf32> -> vector<256x64xf32>
    %c0_3 = arith.constant 0 : index
    %c0_4 = arith.constant 0 : index
    %3 = vector.load %arg3[%c0_3, %c0_4] : memref<1x64xf32, #tpu.memory_space<vmem>>, vector<1x64xf32>
    %4 = vector.broadcast %3 : vector<1x64xf32> to vector<256x64xf32>
    %5 = arith.addf %2, %4 : vector<256x64xf32>
    %cst_5 = arith.constant 0.000000e+00 : f32
    %6 = vector.broadcast %cst_5 : f32 to vector<256x64xf32>
    %7 = arith.maximumf %5, %6 : vector<256x64xf32>
    %8 = arith.truncf %7 : vector<256x64xf32> to vector<256x64xbf16>
    %c0_6 = arith.constant 0 : index
    %c0_7 = arith.constant 0 : index
    %9 = vector.load %arg4[%c0_6, %c0_7] : memref<64x32xbf16, #tpu.memory_space<vmem>>, vector<64x32xbf16>
    %cst_8 = arith.constant dense<0.000000e+00> : vector<256x32xf32>
    %10 = tpu.matmul %8, %9, %cst_8 {dimension_numbers = #tpu.dot_dimension_numbers<[1], [0], [0], [1], [0, 0, 1, 1], [], []>} : vector<256x64xbf16>, vector<64x32xbf16>, vector<256x32xf32> -> vector<256x32xf32>
    %c0_9 = arith.constant 0 : index
    %c0_10 = arith.constant 0 : index
    %11 = vector.load %arg5[%c0_9, %c0_10] : memref<1x32xf32, #tpu.memory_space<vmem>>, vector<1x32xf32>
    %12 = vector.broadcast %11 : vector<1x32xf32> to vector<256x32xf32>
    %13 = arith.addf %10, %12 : vector<256x32xf32>
    %cst_11 = arith.constant 0.000000e+00 : f32
    %14 = vector.broadcast %cst_11 : f32 to vector<256x32xf32>
    %15 = arith.maximumf %13, %14 : vector<256x32xf32>
    %16 = arith.truncf %15 : vector<256x32xf32> to vector<256x32xbf16>
    %c0_12 = arith.constant 0 : index
    %c0_13 = arith.constant 0 : index
    %17 = vector.load %arg6[%c0_12, %c0_13] : memref<32x128xbf16, #tpu.memory_space<vmem>>, vector<32x128xbf16>
    %cst_14 = arith.constant dense<0.000000e+00> : vector<256x128xf32>
    %18 = tpu.matmul %16, %17, %cst_14 {dimension_numbers = #tpu.dot_dimension_numbers<[1], [0], [0], [1], [0, 0, 1, 1], [], []>} : vector<256x32xbf16>, vector<32x128xbf16>, vector<256x128xf32> -> vector<256x128xf32>
    %c0_15 = arith.constant 0 : index
    %c0_16 = arith.constant 0 : index
    %19 = vector.load %arg7[%c0_15, %c0_16] : memref<1x128xf32, #tpu.memory_space<vmem>>, vector<1x128xf32>
    %20 = vector.broadcast %19 : vector<1x128xf32> to vector<256x128xf32>
    %21 = arith.addf %18, %20 : vector<256x128xf32>
    %cst_17 = arith.constant dense<0xFF800000> : vector<256xf32>
    %22 = vector.multi_reduction <maximumf>, %21, %cst_17 [1] : vector<256x128xf32> to vector<256xf32>
    %23 = vector.shape_cast %22 : vector<256xf32> to vector<256x1xf32>
    %24 = vector.broadcast %23 : vector<256x1xf32> to vector<256x128xf32>
    %25 = arith.subf %21, %24 : vector<256x128xf32>
    %26 = math.exp %25 : vector<256x128xf32>
    %cst_18 = arith.constant dense<0.000000e+00> : vector<256xf32>
    %27 = vector.multi_reduction <add>, %26, %cst_18 [1] : vector<256x128xf32> to vector<256xf32>
    %28 = vector.shape_cast %27 : vector<256xf32> to vector<256x1xf32>
    %29 = math.log %28 : vector<256x1xf32>
    %30 = vector.broadcast %29 : vector<256x1xf32> to vector<256x128xf32>
    %31 = arith.subf %25, %30 : vector<256x128xf32>
    %c0_19 = arith.constant 0 : index
    %c0_20 = arith.constant 0 : index
    %32 = vector.load %arg8[%c0_19, %c0_20] : memref<256x128xf32, #tpu.memory_space<vmem>>, vector<256x128xf32>
    tpu.vector_store %arg8[%c0_19, %c0_20], %31 {strides = array<i32>} : memref<256x128xf32, #tpu.memory_space<vmem>>, vector<256x128xf32>,
    return
  }
  func.func @transform_0(%arg0: i32) -> (i32, i32) {
    %c0_i32 = arith.constant 0 : i32
    %c0_i32_0 = arith.constant 0 : i32
    return %arg0, %c0_i32 : i32, i32
  }
  func.func @transform_1(%arg0: i32) -> (i32, i32) {
    %c0_i32 = arith.constant 0 : i32
    %c0_i32_0 = arith.constant 0 : i32
    %c0_i32_1 = arith.constant 0 : i32
    return %c0_i32, %c0_i32_0 : i32, i32
  }
  func.func @transform_2(%arg0: i32) -> (i32, i32) {
    %c0_i32 = arith.constant 0 : i32
    %c0_i32_0 = arith.constant 0 : i32
    %c0_i32_1 = arith.constant 0 : i32
    return %c0_i32, %c0_i32_0 : i32, i32
  }
  func.func @transform_3(%arg0: i32) -> (i32, i32) {
    %c0_i32 = arith.constant 0 : i32
    %c0_i32_0 = arith.constant 0 : i32
    %c0_i32_1 = arith.constant 0 : i32
    return %c0_i32, %c0_i32_0 : i32, i32
  }
  func.func @transform_4(%arg0: i32) -> (i32, i32) {
    %c0_i32 = arith.constant 0 : i32
    %c0_i32_0 = arith.constant 0 : i32
    %c0_i32_1 = arith.constant 0 : i32
    return %c0_i32, %c0_i32_0 : i32, i32
  }
  func.func @transform_5(%arg0: i32) -> (i32, i32) {
    %c0_i32 = arith.constant 0 : i32
    %c0_i32_0 = arith.constant 0 : i32
    %c0_i32_1 = arith.constant 0 : i32
    return %c0_i32, %c0_i32_0 : i32, i32
  }
  func.func @transform_6(%arg0: i32) -> (i32, i32) {
    %c0_i32 = arith.constant 0 : i32
    %c0_i32_0 = arith.constant 0 : i32
    %c0_i32_1 = arith.constant 0 : i32
    return %c0_i32, %c0_i32_0 : i32, i32
  }
  func.func @transform_7(%arg0: i32) -> (i32, i32) {
    %c0_i32 = arith.constant 0 : i32
    %c0_i32_0 = arith.constant 0 : i32
    return %arg0, %c0_i32 : i32, i32
  }
}

</mosaic_0001>

<bundles_post_ra>
// kernel: tpu_custom_call.1
= control target key start
LH: loop header
LB: loop body
LE: loop exit
PB: predicated region body
PF: predicated region fallthrough
CT: control target
= control target key end

     0   :  { %12 = vsyncpa [#allocation3], 0  ;;  %s2965_s0 = inlined_call_operand.hbm [shape: bf16[512,128], index: 0, kind: input, shape index: {}]   ;;  %s2966_s1 = inlined_call_operand.vmem [shape: bf16[128,64], index: 1, kind: input, shape index: {}]   ;;  %s2967_s2 = inlined_call_operand.vmem [shape: f32[1,64], index: 2, kind: input, shape index: {}]   ;;  %s2968_s3 = inlined_call_operand.vmem [shape: bf16[64,32], index: 3, kind: input, shape index: {}]   ;;  %s2969_s4 = inlined_call_operand.vmem [shape: f32[1,32], index: 4, kind: input, shape index: {}]   ;;  %s2970_s5 = inlined_call_operand.vmem [shape: bf16[32,128], index: 5, kind: input, shape index: {}]   ;;  %s2971_s6 = inlined_call_operand.vmem [shape: f32[1,128], index: 6, kind: input, shape index: {}]   ;;  %s2972_s7 = inlined_call_operand.hbm [shape: f32[512,128], index: 7, kind: output, shape index: {}]  }
   0x1   :  { %14 = vsyncpa [#allocation3 + $0x1], 0 }
   0x2   :  { %15 = vsyncpa [#allocation4], 0 }
   0x3   :  { %17 = vsyncpa [#allocation4 + $0x1], 0  ;;  %s2304_s24 = smov 0   ;;  %s2306_s25 = smov 0  }
   0x4   :  { %s2308_s26 = smov 0   ;;  %s2310_s27 = smov 0  }
   0x5 LB: > { %s2325_s28 = sadd.s32 4294967295, %s2256_s27   ;;  %s1677_s29 = sadd.s32 4294967294, %s2256_s27   ;;  %s2256_s27 = sphi %s2310_s27, %s2985_s27   ;;  %s2252_s26 = sphi %s2308_s26, %s2984_s26   ;;  %s2248_s25 = sphi %s2306_s25, %s2983_s25   ;;  %s2244_s24 = sphi %s2304_s24, %s2982_s24  }
   0x6   : > { %s2329_s30 = sadd.s32 1, %s2256_s27   ;;  %s30_s8 = sadd.s32 1, %s2252_s26 }
   0x7   : > { %s27_s9 = ssub.s32 %s2256_s27, %s2329_s30  ;;  %p37_p0 = scmp.ne.s32.totalorder %s2252_s26, %s2248_s25 }
   0x8   : > { %p28_p1 = scmp.eq.s32.totalorder %s27_s9, 0  ;;  %p38_p2 = scmp.eq.s32.totalorder %s2256_s27, 0 }
   0x9   : > { %p43_p3 = scmp.ne.s32.totalorder %s2248_s25, %s2244_s24  ;;  %p44_p4 = scmp.eq.s32.totalorder %s2325_s28, 0 }
   0xa   : > { %s2341_s10 = scalar_select %p28_p1, %s2252_s26, %s30_s8  }
   0xb   : > { %p2343_p5 = por %p38_p2, %p37_p0  ;;  %p2347_p6 = por %p44_p4, %p43_p3 }
   0xc   : > { %p193_p7 = scmp.eq.s32.totalorder %s2325_s28, 1  ;;  %p199_p8 = scmp.eq.s32.totalorder %s1677_s29, 1 }
   0xd   : > { %p1964_p10 = scmp.lt.s32.totalorder %s2256_s27, 2  ;;  %s237_s15 = sand.u32 1, %s2252_s26  }
   0xe   : > { %p2354_p11 = por %p193_p7, %p37_p0  ;;  %p2358_p12 = por %p199_p8, %p43_p3 }
   0xf   : > { %s1756_s16 = sshll.u32 %s2256_s27, 11  ;;  %s1680_s17 = sshll.u32 %s237_s15, 7 }
  0x10   : > { %s2976_s13 = scalar_select %p2354_p11, 1, 0 }
  0x11   : > { %s2977_s14 = scalar_select %p2358_p12, 1, 0 }
  0x12   : > { %s2367_s20 = scalar_lea.hbm %s2965_s0, %s1756_s16  ;;  %s241_s21 = scalar_lea.vmem [#allocation2], %s1680_s17 }
  0x13   : > { %s248_s22 = sshll.u32 %s241_s21, 4  ;;  %p2371_p13 = pnand %p1964_p10, %p2343_p5  ;;  %s2375_s22 = int_to_ptr.vmem [resolvable:$true] %s248_s22 }
  0x14   : > { %s2377_s29 = scalar_lea.sflag [#allocation3], %s237_s15  ;;  %s2160_s8 = scalar_lea.hbm %s2367_s20, 2048 }
  0x15   : > { %p2161_p0 = scmp.ne.s32.totalorder %s2367_s20, %s2160_s8  ;;  %p2162_p1 = pneg %p2371_p13 }
  0x16   : > { %s2165_s16 = scalar_lea.hbm %s2965_s0, 4096  ;;  %p2166_p4 = scmp.lt.u32.totalorder %s2367_s20, %s2965_s0 }
  0x17   : > { %p2163_p2 = pnand %p2162_p1, %p2161_p0  ;;  %p2167_p5 = scmp.lt.u32.totalorder %s2165_s16, %s2160_s8 }
  0x18   : > { %p2169_p8 = scmp.lt.u32.totalorder %s2160_s8, %s2367_s20 }
  0x19   : > { %p2164_p3 = pneg %p2163_p2  ;;  %p2168_p7 = por %p2167_p5, %p2166_p4 }
  0x1b   : > { %p2170_p10 = por %p2169_p8, %p2168_p7 }
  0x1d   : > { %p2171_p9 = pnand %p2170_p10, %p2164_p3 }
  0x1f   : > { %2174 = shalt.err (!%p2171_p9)
}
  0x20   : > { %s2175_s15 = scalar_lea.vmem %s2375_s22, 2048  ;;  %s2258_s19 = smov [#allocation2]  }
  0x21   : > { %p2176_p0 = scmp.ne.s32.totalorder %s2375_s22, %s2175_s15  ;;  %s2180_s21 = sshll.u32 %s2258_s19, 4  ;;  %s2181_s21 = int_to_ptr.vmem [resolvable:$false] %s2180_s21 }
  0x22   : > { %s2182_s9 = scalar_lea.vmem %s2181_s21, 4096  ;;  %p2183_p11 = scmp.lt.s32.totalorder %s2375_s22, %s2181_s21 }
  0x23   : > { %p2178_p2 = pnand %p2176_p0, %p2162_p1  ;;  %p2184_p4 = scmp.lt.s32.totalorder %s2182_s9, %s2175_s15 }
  0x25   : > { %p2179_p12 = pneg %p2178_p2  ;;  %p2185_p5 = por %p2184_p4, %p2183_p11 }
  0x27   : > { %p2186_p7 = pnand %p2185_p5, %p2179_p12 }
  0x29   : > { %2189 = shalt.err (!%p2186_p7)
}
  0x2a   : > { %s2259_s8 = smov 64   ;;  %s2260_s11 = smov 4  }
  0x2b   : > { %1959 = dma.hbm_to_vmem [thread:$0]  (!%p2371_p13), %s2367_s20, 2048, %s2375_s22, %s2377_s29, %s2259_s8, %s2259_s8, %s2260_s11  }
  0x2c   : > { %p1683_p9 = scmp.ge.s32.totalorder %s2256_s27, 1  ;;  %p256_p1 = scmp.lt.s32.totalorder %s2256_s27, 3 }
  0x2e   : > { %p257_p3 = pnand %p1683_p9, %p256_p1 }
  0x2f   : > { %s2408_s16 = sand.u32 (!%p257_p3), 1, %s2248_s25  }
  0x30   : > { %260 = sbr.rel (%p257_p3) target bundleno = 1140 (0x474), region = 48  ;;  %s1684_s17 = sshll.u32 (!%p257_p3), %s2408_s16, 7 }
  0x31   : > { %s263_s18 = scalar_lea.sflag (!%p257_p3), [#allocation3], %s2408_s16  ;;  %s2412_s15 = scalar_lea.vmem (!%p257_p3), [#allocation2], %s1684_s17 }
  0x37   : > { %2235 = dma.done.wait (%p2347_p6), %s263_s18, 2048  }
  0x38   : > { %2237 = vsyncadd (%p2347_p6), %s263_s18, 4294965248  ;;  %v2002_v0 = vld [vmem:[%s2966_s1] sm:$0xff]   ;;  %v2003_v1 = vld [vmem:[%s2966_s1 + $0x8] sm:$0xff]   ;;  %vm747_vm0 = vcmask 523264   ;;  %vm1028_vm1 = vcmask 261120   ;;  %s1685_s11 = sshll.u32 %s2408_s16, 8 }
  0x39   : > { %1820 = vmatprep.subr.bf16.mxu0 %v2002_v0  ;;  %v2004_v2 = vld [vmem:[%s2966_s1 + $0x10] sm:$0xff]   ;;  %v2005_v3 = vld [vmem:[%s2966_s1 + $0x18] sm:$0xff]   ;;  %v2010_v4 = vld [vmem:[%s2412_s15] sm:$0xff]   ;;  %s2849_s17 = scalar_lea.vmem [#allocation5], %s1685_s11  ;;  %s1757_s18 = sshll.u32 %s2325_s28, 12 }
  0x3a   : > { %1821 = vmatpush3.bf16.msra.mxu0 %v2002_v0  ;;  %1836 = vmatprep.mubr.bf16.mxu0 %v2010_v4  ;;  %v2006_v5 = vld [vmem:[%s2966_s1 + $0x20] sm:$0xff]   ;;  %v2007_v6 = vld [vmem:[%s2966_s1 + $0x28] sm:$0xff]   ;;  %v2008_v7 = vld [vmem:[%s2966_s1 + $0x30] sm:$0xff]   ;;  %s1604_s20 = sshll.u32 %s2849_s17, 4  ;;  %s2917_s29 = scalar_lea.hbm %s2972_s7, %s1757_s18  ;;  %s2919_s20 = int_to_ptr.vmem [resolvable:$true] %s1604_s20 }
  0x3b   : > { %1822 = vmatprep.subr.bf16.mxu0 %v2003_v1  ;;  %v2009_v8 = vld [vmem:[%s2966_s1 + $0x38] sm:$0xff]   ;;  %v2026_v9 = vld [vmem:[%s2968_s3] sm:$0xff]   ;;  %v2027_v10 = vld [vmem:[%s2968_s3 + $0x8] sm:$0xff]   ;;  %s1591_s28 = scalar_lea.sflag [#allocation4], %s2408_s16  ;;  %p2979_p11 = scmp.ne.s32.totalorder %s2976_s13, 0 }
  0x3c   : > { %1944 = vmatprep.subr.bf16.mxu1 %v2026_v9  ;;  %v2011_v11 = vld [vmem:[%s2412_s15 + $0x8] sm:$0xff]   ;;  %v2028_v12 = vld [vmem:[%s2968_s3 + $0x10] sm:$0xff]   ;;  %v2029_v14 = vld [vmem:[%s2968_s3 + $0x18] sm:$0xff]   ;;  %s2261_s19 = smov [#allocation5]  }
  0x3d   : > { %1948 = vmatpush3.bf16.msra.mxu1 %v2026_v9  ;;  %v2012_v13 = vld [vmem:[%s2412_s15 + $0x10] sm:$0xff]   ;;  %v2013_v15 = vld [vmem:[%s2412_s15 + $0x18] sm:$0xff]   ;;  %v2014_v16 = vld [vmem:[%s2412_s15 + $0x20] sm:$0xff]   ;;  %s2194_s21 = sshll.u32 %s2261_s19, 4  ;;  %s2195_s21 = int_to_ptr.vmem [resolvable:$false] %s2194_s21 }
  0x3e   : > { %1823 = vmatpush3.bf16.msra.mxu0 %v2003_v1  ;;  %1945 = vmatprep.subr.bf16.mxu1 %v2027_v10  ;;  %v2015_v17 = vld [vmem:[%s2412_s15 + $0x28] sm:$0xff]   ;;  %v2016_v18 = vld [vmem:[%s2412_s15 + $0x30] sm:$0xff]   ;;  %v2017_v19 = vld [vmem:[%s2412_s15 + $0x38] sm:$0xff]   ;;  %s2196_s9 = scalar_lea.vmem %s2195_s21, 8192  ;;  %p2197_p8 = scmp.lt.s32.totalorder %s2919_s20, %s2195_s21 }
  0x3f   : > { %1824 = vmatprep.subr.bf16.mxu0 %v2004_v2  ;;  %v2018_v20 = vld [vmem:[%s2412_s15 + $0x40] sm:$0xff]   ;;  %v2019_v21 = vld [vmem:[%s2412_s15 + $0x48] sm:$0xff]   ;;  %v2020_v22 = vld [vmem:[%s2412_s15 + $0x50] sm:$0xff]  }
  0x40   : > { %v2021_v23 = vld [vmem:[%s2412_s15 + $0x58] sm:$0xff]   ;;  %v2022_v24 = vld [vmem:[%s2412_s15 + $0x60] sm:$0xff]   ;;  %v2023_v25 = vld [vmem:[%s2412_s15 + $0x68] sm:$0xff]  }
  0x41   : > { %1949 = vmatpush3.bf16.msra.mxu1 %v2027_v10  ;;  %v2024_v26 = vld [vmem:[%s2412_s15 + $0x70] sm:$0xff]   ;;  %v2025_v27 = vld [vmem:[%s2412_s15 + $0x78] sm:$0xff]   ;;  %v2473_v28 = vld [vmem:[%s2970_s5] sm:$0xff]   ;;  %s2190_s15 = scalar_lea.vmem %s2919_s20, 4096 }
  0x42   : > { %1825 = vmatpush3.bf16.msra.mxu0 %v2004_v2  ;;  %1946 = vmatprep.subr.bf16.mxu1 %v2028_v12  ;;  %v2479_v29 = vld [vmem:[%s2967_s2] ss:$0 sm:$0xff]  ;;  %p2191_p6 = scmp.ne.s32.totalorder %s2919_s20, %s2190_s15  ;;  %p2198_p10 = scmp.lt.s32.totalorder %s2196_s9, %s2190_s15 }
  0x43   : > { %1826 = vmatprep.subr.bf16.mxu0 %v2005_v3 }
  0x44   : > { %p2192_p12 = pnand %p2191_p6, %p2979_p11  ;;  %p2199_p0 = por %p2198_p10, %p2197_p8 }
  0x45   : > { %1950 = vmatpush3.bf16.msra.mxu1 %v2028_v12 }
  0x46   : > { %1827 = vmatpush3.bf16.msra.mxu0 %v2005_v3  ;;  %1947 = vmatprep.subr.bf16.mxu1 %v2029_v14  ;;  %p2193_p13 = pneg %p2192_p12 }
  0x47   : > { %1828 = vmatprep.subr.bf16.mxu0 %v2006_v5 }
  0x48   : > { %p2200_p2 = pnand %p2199_p0, %p2193_p13 }
  0x49   : > { %1951 = vmatpush3.bf16.msra.mxu1 %v2029_v14 }
  0x4a   : > { %1829 = vmatpush3.bf16.msra.mxu0 %v2006_v5  ;;  %1908 = vmatprep.subr.bf16.mxu1 %v2473_v28 }
  0x4b   : > { %1830 = vmatprep.subr.bf16.mxu0 %v2007_v6 }
  0x4e   : > { %1831 = vmatpush3.bf16.msra.mxu0 %v2007_v6 }
  0x4f   : > { %1832 = vmatprep.subr.bf16.mxu0 %v2008_v7 }
  0x52   : > { %1833 = vmatpush3.bf16.msra.mxu0 %v2008_v7 }
  0x53   : > { %1834 = vmatprep.subr.bf16.mxu0 %v2009_v8 }
  0x56   : > { %1835 = vmatpush3.bf16.msra.mxu0 %v2009_v8 }
  0x57   : > { %1868 = vmatprep.subr.bf16.mxu0 %v2026_v9 }
  0x59   : > { %1837 = vmatmul.mubr.bf16.vlgmr.msra.gmra.mrb[0].mxu0 %v2011_v11 }
  0x5a   : > { %1840 = vmatprep.mubr.bf16.mxu0 %v2012_v13  ;;  %1869 = vmatpush3.bf16.msra.mxu0 %v2026_v9 }
  0x5b   : > { %1870 = vmatprep.subr.bf16.mxu0 %v2027_v10 }
  0x5e   : > { %1871 = vmatpush3.bf16.msra.mxu0 %v2027_v10 }
  0x5f   : > { %1872 = vmatprep.subr.bf16.mxu0 %v2028_v12 }
  0x61   : > { %1841 = vmatmul.mubr.bf16.gmra.mrb[4].mxu0 %v2013_v15 }
  0x62   : > { %1844 = vmatprep.mubr.bf16.mxu0 %v2014_v16  ;;  %1873 = vmatpush3.bf16.msra.mxu0 %v2028_v12 }
  0x63   : > { %1874 = vmatprep.subr.bf16.mxu0 %v2029_v14 }
  0x66   : > { %1875 = vmatpush3.bf16.msra.mxu0 %v2029_v14 }
  0x69   : > { %1845 = vmatmul.mubr.bf16.gmra.mrb[8].mxu0 %v2015_v17 }
  0x6a   : > { %1848 = vmatprep.mubr.bf16.mxu0 %v2016_v18 }
  0x71   : > { %1849 = vmatmul.mubr.bf16.gmra.mrb[12].mxu0 %v2017_v19 }
  0x72   : > { %1852 = vmatprep.mubr.bf16.mxu0 %v2018_v20 }
  0x79   : > { %1853 = vmatmul.mubr.bf16.gmra.mrb[16].mxu0 %v2019_v21 }
  0x7a   : > { %1856 = vmatprep.mubr.bf16.mxu0 %v2020_v22 }
  0x81   : > { %1857 = vmatmul.mubr.bf16.gmra.mrb[20].mxu0 %v2021_v23 }
  0x82   : > { %1860 = vmatprep.mubr.bf16.mxu0 %v2022_v24 }
  0x89   : > { %1861 = vmatmul.mubr.bf16.gmra.mrb[24].mxu0 %v2023_v25  ;;  %v2031_v25 = vld [vmem:[%s2970_s5 + $0x8] sm:$0xff]  }
  0x8a   : > { %1864 = vmatprep.mubr.bf16.mxu0 %v2024_v26 }
  0x91   : > { %1865 = vmatmul.mubr.bf16.gmra.mrb[28].mxu0 %v2025_v27 }
 0x12c   : > { %v1838_v30 = vpop.f32.mrb[0].mxu0 }
 0x12d   : > { %v542_v31 = vadd.f32 %v1838_v30, %v2479_v29  ;;  %v533_v32 = vpop.f32.mrb[1].mxu0 }
 0x12e   : > { %v534_v33 = vadd.f32 %v2479_v29, %v533_v32  ;;  %v1839_v34 = vpop.f32.mrb[2].mxu0 }
 0x12f   : > { %v545_v35 = vadd.f32 %v1839_v34, %v2479_v29  ;;  %v536_v36 = vpop.f32.mrb[3].mxu0  ;;  %v662_v38 = vmax.f32 %v542_v31, 0.0 }
 0x130   : > { %v537_v37 = vadd.f32 %v2479_v29, %v536_v36  ;;  %v660_v40 = vmax.f32 %v534_v33, 0.0 }
 0x131   : > { %v663_v39 = vmax.f32 %v545_v35, 0.0 }
 0x132   : > { %v661_v41 = vmax.f32 %v537_v37, 0.0 }
 0x133   : > { %v693_v42 = vpack.c.bf16 %v663_v39, %v662_v38 }
 0x134   : > { %v692_v43 = vpack.c.bf16 %v661_v41, %v660_v40  ;;  %v1842_v44 = vpop.f32.mrb[4].mxu0 }
 0x135   : > { %v558_v45 = vadd.f32 %v1842_v44, %v2479_v29  ;;  %v549_v46 = vpop.f32.mrb[5].mxu0 }
 0x136   : > { %v550_v47 = vadd.f32 %v2479_v29, %v549_v46  ;;  %v1843_v48 = vpop.f32.mrb[6].mxu0  ;;  %1876 = vmatprep.mubr.msk.bf16.mxu0 %vm747_vm0, %v692_v43 }
 0x137   : > { %v666_v49 = vmax.f32 %v558_v45, 0.0  ;;  %v561_v50 = vadd.f32 %v1843_v48, %v2479_v29  ;;  %v552_v51 = vpop.f32.mrb[7].mxu0  ;;  %1877 = vmatmul.mubr.msk.bf16.vlgmr.msra.gmra.mrb[32].mxu0 %vm747_vm0, %v693_v42 }
 0x138   : > { %v553_v52 = vadd.f32 %v2479_v29, %v552_v51  ;;  %v664_v54 = vmax.f32 %v550_v47, 0.0 }
 0x139   : > { %v667_v53 = vmax.f32 %v561_v50, 0.0 }
 0x13a   : > { %v665_v55 = vmax.f32 %v553_v52, 0.0 }
 0x13b   : > { %v695_v56 = vpack.c.bf16 %v667_v53, %v666_v49 }
 0x13c   : > { %v694_v57 = vpack.c.bf16 %v665_v55, %v664_v54  ;;  %v1846_v58 = vpop.f32.mrb[8].mxu0 }
 0x13d   : > { %v574_v59 = vadd.f32 %v1846_v58, %v2479_v29  ;;  %v565_v60 = vpop.f32.mrb[9].mxu0 }
 0x13e   : > { %v566_v61 = vadd.f32 %v2479_v29, %v565_v60  ;;  %v1847_v62 = vpop.f32.mrb[10].mxu0  ;;  %1880 = vmatprep.mubr.msk.bf16.mxu0 %vm747_vm0, %v694_v57 }
 0x13f   : > { %v670_v63 = vmax.f32 %v574_v59, 0.0  ;;  %v577_v0 = vadd.f32 %v1847_v62, %v2479_v29  ;;  %v568_v1 = vpop.f32.mrb[11].mxu0  ;;  %1881 = vmatmul.mubr.msk.bf16.gmra.mrb[36].mxu0 %vm747_vm0, %v695_v56 }
 0x140   : > { %v569_v2 = vadd.f32 %v2479_v29, %v568_v1  ;;  %v668_v4 = vmax.f32 %v566_v61, 0.0 }
 0x141   : > { %v671_v3 = vmax.f32 %v577_v0, 0.0 }
 0x142   : > { %v669_v5 = vmax.f32 %v569_v2, 0.0 }
 0x143   : > { %v697_v6 = vpack.c.bf16 %v671_v3, %v670_v63 }
 0x144   : > { %v696_v7 = vpack.c.bf16 %v669_v5, %v668_v4  ;;  %v1850_v8 = vpop.f32.mrb[12].mxu0 }
 0x145   : > { %v590_v9 = vadd.f32 %v1850_v8, %v2479_v29  ;;  %v581_v10 = vpop.f32.mrb[13].mxu0 }
 0x146   : > { %v582_v11 = vadd.f32 %v2479_v29, %v581_v10  ;;  %v1851_v12 = vpop.f32.mrb[14].mxu0  ;;  %1884 = vmatprep.mubr.msk.bf16.mxu0 %vm747_vm0, %v696_v7 }
 0x147   : > { %v674_v13 = vmax.f32 %v590_v9, 0.0  ;;  %v593_v14 = vadd.f32 %v1851_v12, %v2479_v29  ;;  %v584_v15 = vpop.f32.mrb[15].mxu0  ;;  %1885 = vmatmul.mubr.msk.bf16.gmra.mrb[40].mxu0 %vm747_vm0, %v697_v6 }
 0x148   : > { %v585_v16 = vadd.f32 %v2479_v29, %v584_v15  ;;  %v672_v18 = vmax.f32 %v582_v11, 0.0 }
 0x149   : > { %v675_v17 = vmax.f32 %v593_v14, 0.0 }
 0x14a   : > { %v673_v19 = vmax.f32 %v585_v16, 0.0  ;;  %v2536_v16 = vld [vmem:[%s2969_s4] ss:$0 sm:$0xff] }
 0x14b   : > { %v699_v20 = vpack.c.bf16 %v675_v17, %v674_v13 }
 0x14c   : > { %v1854_v21 = vpop.f32.mrb[16].mxu0  ;;  %v698_v22 = vpack.c.bf16 %v673_v19, %v672_v18 }
 0x14d   : > { %v606_v23 = vadd.f32 %v1854_v21, %v2479_v29  ;;  %v597_v24 = vpop.f32.mrb[17].mxu0 }
 0x14e   : > { %v598_v26 = vadd.f32 %v2479_v29, %v597_v24  ;;  %v1855_v27 = vpop.f32.mrb[18].mxu0  ;;  %1888 = vmatprep.mubr.msk.bf16.mxu1 %vm747_vm0, %v698_v22 }
 0x14f   : > { %v678_v30 = vmax.f32 %v606_v23, 0.0  ;;  %v609_v31 = vadd.f32 %v1855_v27, %v2479_v29  ;;  %v600_v32 = vpop.f32.mrb[19].mxu0  ;;  %1889 = vmatmul.mubr.msk.bf16.vlgmr.msra.gmra.mrb[0].mxu1 %vm747_vm0, %v699_v20 }
 0x150   : > { %v601_v33 = vadd.f32 %v2479_v29, %v600_v32  ;;  %1909 = vmatpush3.bf16.msra.mxu1 %v2473_v28  ;;  %v676_v35 = vmax.f32 %v598_v26, 0.0 }
 0x151   : > { %v679_v34 = vmax.f32 %v609_v31, 0.0  ;;  %1910 = vmatprep.subr.bf16.mxu1 %v2031_v25 }
 0x152   : > { %v677_v36 = vmax.f32 %v601_v33, 0.0 }
 0x153   : > { %v701_v37 = vpack.c.bf16 %v679_v34, %v678_v30 }
 0x154   : > { %v700_v38 = vpack.c.bf16 %v677_v36, %v676_v35  ;;  %v1858_v39 = vpop.f32.mrb[20].mxu0  ;;  %1911 = vmatpush3.bf16.msra.mxu1 %v2031_v25 }
 0x155   : > { %v622_v40 = vadd.f32 %v1858_v39, %v2479_v29  ;;  %v613_v41 = vpop.f32.mrb[21].mxu0 }
 0x156   : > { %v614_v42 = vadd.f32 %v2479_v29, %v613_v41  ;;  %v1859_v43 = vpop.f32.mrb[22].mxu0  ;;  %1892 = vmatprep.mubr.msk.bf16.mxu1 %vm747_vm0, %v700_v38 }
 0x157   : > { %v682_v44 = vmax.f32 %v622_v40, 0.0  ;;  %v625_v45 = vadd.f32 %v1859_v43, %v2479_v29  ;;  %v616_v28 = vpop.f32.mrb[23].mxu0  ;;  %1893 = vmatmul.mubr.msk.bf16.gmra.mrb[4].mxu1 %vm747_vm0, %v701_v37 }
 0x158   : > { %v617_v46 = vadd.f32 %v2479_v29, %v616_v28  ;;  %v680_v48 = vmax.f32 %v614_v42, 0.0 }
 0x159   : > { %v683_v47 = vmax.f32 %v625_v45, 0.0 }
 0x15a   : > { %v681_v49 = vmax.f32 %v617_v46, 0.0 }
 0x15b   : > { %v703_v50 = vpack.c.bf16 %v683_v47, %v682_v44 }
 0x15c   : > { %v702_v51 = vpack.c.bf16 %v681_v49, %v680_v48  ;;  %v1862_v52 = vpop.f32.mrb[24].mxu0 }
 0x15d   : > { %v638_v53 = vadd.f32 %v1862_v52, %v2479_v29  ;;  %v629_v54 = vpop.f32.mrb[25].mxu0 }
 0x15e   : > { %v630_v55 = vadd.f32 %v2479_v29, %v629_v54  ;;  %v1863_v56 = vpop.f32.mrb[26].mxu0  ;;  %1896 = vmatprep.mubr.msk.bf16.mxu1 %vm747_vm0, %v702_v51 }
 0x15f   : > { %v686_v57 = vmax.f32 %v638_v53, 0.0  ;;  %v641_v58 = vadd.f32 %v1863_v56, %v2479_v29  ;;  %v632_v59 = vpop.f32.mrb[27].mxu0  ;;  %1897 = vmatmul.mubr.msk.bf16.gmra.mrb[8].mxu1 %vm747_vm0, %v703_v50 }
 0x160   : > { %v633_v60 = vadd.f32 %v2479_v29, %v632_v59  ;;  %v684_v62 = vmax.f32 %v630_v55, 0.0 }
 0x161   : > { %v687_v61 = vmax.f32 %v641_v58, 0.0 }
 0x162   : > { %v685_v63 = vmax.f32 %v633_v60, 0.0 }
 0x163   : > { %v705_v0 = vpack.c.bf16 %v687_v61, %v686_v57 }
 0x164   : > { %v704_v1 = vpack.c.bf16 %v685_v63, %v684_v62  ;;  %v1866_v2 = vpop.f32.mrb[28].mxu0 }
 0x165   : > { %v654_v3 = vadd.f32 %v1866_v2, %v2479_v29  ;;  %v645_v4 = vpop.f32.mrb[29].mxu0 }
 0x166   : > { %v646_v5 = vadd.f32 %v2479_v29, %v645_v4  ;;  %v1867_v6 = vpop.f32.mrb[30].mxu0  ;;  %1900 = vmatprep.mubr.msk.bf16.mxu1 %vm747_vm0, %v704_v1 }
 0x167   : > { %v690_v7 = vmax.f32 %v654_v3, 0.0  ;;  %v657_v8 = vadd.f32 %v1867_v6, %v2479_v29  ;;  %v648_v9 = vpop.f32.mrb[31].mxu0  ;;  %1901 = vmatmul.mubr.msk.bf16.gmra.mrb[12].mxu1 %vm747_vm0, %v705_v0 }
 0x168   : > { %v649_v10 = vadd.f32 %v2479_v29, %v648_v9  ;;  %v688_v12 = vmax.f32 %v646_v5, 0.0 }
 0x169   : > { %v691_v11 = vmax.f32 %v657_v8, 0.0 }
 0x16a   : > { %v689_v13 = vmax.f32 %v649_v10, 0.0 }
 0x16b   : > { %v707_v14 = vpack.c.bf16 %v691_v11, %v690_v7 }
 0x16c   : > { %v706_v15 = vpack.c.bf16 %v689_v13, %v688_v12 }
 0x16e   : > { %1904 = vmatprep.mubr.msk.bf16.mxu1 %vm747_vm0, %v706_v15 }
 0x16f   : > { %1905 = vmatmul.mubr.msk.bf16.gmra.mrb[16].mxu1 %vm747_vm0, %v707_v14 }
 0x20a   : > { %v1878_v17 = vpop.f32.mrb[32].mxu0 }
 0x20b   : > { %v839_v18 = vadd.f32 %v1878_v17, %v2536_v16  ;;  %v830_v19 = vpop.f32.mrb[33].mxu0 }
 0x20c   : > { %v831_v29 = vadd.f32 %v2536_v16, %v830_v19  ;;  %v1879_v20 = vpop.f32.mrb[34].mxu0 }
 0x20d   : > { %v842_v21 = vadd.f32 %v1879_v20, %v2536_v16  ;;  %v833_v22 = vpop.f32.mrb[35].mxu0  ;;  %v959_v24 = vmax.f32 %v839_v18, 0.0 }
 0x20e   : > { %v834_v23 = vadd.f32 %v2536_v16, %v833_v22  ;;  %v957_v26 = vmax.f32 %v831_v29, 0.0 }
 0x20f   : > { %v960_v25 = vmax.f32 %v842_v21, 0.0 }
 0x210   : > { %v958_v27 = vmax.f32 %v834_v23, 0.0 }
 0x211   : > { %v990_v30 = vpack.c.bf16 %v960_v25, %v959_v24 }
 0x212   : > { %v989_v31 = vpack.c.bf16 %v958_v27, %v957_v26  ;;  %v1882_v32 = vpop.f32.mrb[36].mxu0 }
 0x213   : > { %v855_v33 = vadd.f32 %v1882_v32, %v2536_v16  ;;  %v846_v34 = vpop.f32.mrb[37].mxu0 }
 0x214   : > { %v847_v35 = vadd.f32 %v2536_v16, %v846_v34  ;;  %v1883_v36 = vpop.f32.mrb[38].mxu0  ;;  %1912 = vmatprep.mubr.msk.bf16.mxu1 %vm1028_vm1, %v989_v31 }
 0x215   : > { %v858_v37 = vadd.f32 %v1883_v36, %v2536_v16  ;;  %v849_v38 = vpop.f32.mrb[39].mxu0  ;;  %1913 = vmatmul.mubr.msk.bf16.vlgmr.msra.gmra.mrb[20].mxu1 %vm1028_vm1, %v990_v30  ;;  %v963_v40 = vmax.f32 %v855_v33, 0.0 }
 0x216   : > { %v850_v39 = vadd.f32 %v2536_v16, %v849_v38  ;;  %v961_v42 = vmax.f32 %v847_v35, 0.0 }
 0x217   : > { %v964_v41 = vmax.f32 %v858_v37, 0.0 }
 0x218   : > { %v962_v43 = vmax.f32 %v850_v39, 0.0 }
 0x219   : > { %v992_v44 = vpack.c.bf16 %v964_v41, %v963_v40 }
 0x21a   : > { %v991_v45 = vpack.c.bf16 %v962_v43, %v961_v42  ;;  %v1886_v28 = vpop.f32.mrb[40].mxu0 }
 0x21b   : > { %v871_v46 = vadd.f32 %v1886_v28, %v2536_v16  ;;  %v862_v47 = vpop.f32.mrb[41].mxu0 }
 0x21c   : > { %v863_v48 = vadd.f32 %v2536_v16, %v862_v47  ;;  %v1887_v49 = vpop.f32.mrb[42].mxu0  ;;  %1916 = vmatprep.mubr.msk.bf16.mxu1 %vm1028_vm1, %v991_v45 }
 0x21d   : > { %v874_v50 = vadd.f32 %v1887_v49, %v2536_v16  ;;  %v865_v51 = vpop.f32.mrb[43].mxu0  ;;  %1917 = vmatmul.mubr.msk.bf16.gmra.mrb[24].mxu1 %vm1028_vm1, %v992_v44  ;;  %v967_v53 = vmax.f32 %v871_v46, 0.0 }
 0x21e   : > { %v866_v52 = vadd.f32 %v2536_v16, %v865_v51  ;;  %v965_v55 = vmax.f32 %v863_v48, 0.0 }
 0x21f   : > { %v968_v54 = vmax.f32 %v874_v50, 0.0 }
 0x220   : > { %v966_v56 = vmax.f32 %v866_v52, 0.0 }
 0x221   : > { %v994_v57 = vpack.c.bf16 %v968_v54, %v967_v53 }
 0x222   : > { %v993_v58 = vpack.c.bf16 %v966_v56, %v965_v55  ;;  %v1890_v59 = vpop.f32.mrb[0].mxu1 }
 0x223   : > { %v887_v60 = vadd.f32 %v1890_v59, %v2536_v16  ;;  %v878_v61 = vpop.f32.mrb[1].mxu1 }
 0x224   : > { %v879_v62 = vadd.f32 %v2536_v16, %v878_v61  ;;  %v1891_v63 = vpop.f32.mrb[2].mxu1  ;;  %1920 = vmatprep.mubr.msk.bf16.mxu1 %vm1028_vm1, %v993_v58 }
 0x225   : > { %v890_v0 = vadd.f32 %v1891_v63, %v2536_v16  ;;  %v881_v1 = vpop.f32.mrb[3].mxu1  ;;  %1921 = vmatmul.mubr.msk.bf16.gmra.mrb[28].mxu1 %vm1028_vm1, %v994_v57  ;;  %v971_v3 = vmax.f32 %v887_v60, 0.0 }
 0x226   : > { %v882_v2 = vadd.f32 %v2536_v16, %v881_v1  ;;  %v969_v5 = vmax.f32 %v879_v62, 0.0 }
 0x227   : > { %v972_v4 = vmax.f32 %v890_v0, 0.0 }
 0x228   : > { %v970_v6 = vmax.f32 %v882_v2, 0.0  ;;  %v2589_v2 = vld [vmem:[%s2971_s6] ss:$0 sm:$0xff] }
 0x229   : > { %v996_v7 = vpack.c.bf16 %v972_v4, %v971_v3 }
 0x22a   : > { %v995_v8 = vpack.c.bf16 %v970_v6, %v969_v5  ;;  %v1894_v9 = vpop.f32.mrb[4].mxu1 }
 0x22b   : > { %v903_v10 = vadd.f32 %v1894_v9, %v2536_v16  ;;  %v894_v11 = vpop.f32.mrb[5].mxu1 }
 0x22c   : > { %v895_v12 = vadd.f32 %v2536_v16, %v894_v11  ;;  %v1895_v13 = vpop.f32.mrb[6].mxu1  ;;  %1924 = vmatprep.mubr.msk.bf16.mxu1 %vm1028_vm1, %v995_v8 }
 0x22d   : > { %v906_v14 = vadd.f32 %v1895_v13, %v2536_v16  ;;  %v897_v15 = vpop.f32.mrb[7].mxu1  ;;  %1925 = vmatmul.mubr.msk.bf16.gmra.mrb[32].mxu1 %vm1028_vm1, %v996_v7  ;;  %v975_v18 = vmax.f32 %v903_v10, 0.0 }
 0x22e   : > { %v898_v17 = vadd.f32 %v2536_v16, %v897_v15  ;;  %v973_v29 = vmax.f32 %v895_v12, 0.0 }
 0x22f   : > { %v976_v19 = vmax.f32 %v906_v14, 0.0 }
 0x230   : > { %v974_v20 = vmax.f32 %v898_v17, 0.0 }
 0x231   : > { %v998_v21 = vpack.c.bf16 %v976_v19, %v975_v18 }
 0x232   : > { %v997_v22 = vpack.c.bf16 %v974_v20, %v973_v29  ;;  %v1898_v23 = vpop.f32.mrb[8].mxu1 }
 0x233   : > { %v919_v24 = vadd.f32 %v1898_v23, %v2536_v16  ;;  %v910_v25 = vpop.f32.mrb[9].mxu1 }
 0x234   : > { %v911_v26 = vadd.f32 %v2536_v16, %v910_v25  ;;  %v1899_v27 = vpop.f32.mrb[10].mxu1  ;;  %1928 = vmatprep.mubr.msk.bf16.mxu1 %vm1028_vm1, %v997_v22 }
 0x235   : > { %v922_v30 = vadd.f32 %v1899_v27, %v2536_v16  ;;  %v913_v31 = vpop.f32.mrb[11].mxu1  ;;  %1929 = vmatmul.mubr.msk.bf16.gmra.mrb[36].mxu1 %vm1028_vm1, %v998_v21  ;;  %v979_v33 = vmax.f32 %v919_v24, 0.0 }
 0x236   : > { %v914_v32 = vadd.f32 %v2536_v16, %v913_v31  ;;  %v977_v35 = vmax.f32 %v911_v26, 0.0 }
 0x237   : > { %v980_v34 = vmax.f32 %v922_v30, 0.0 }
 0x238   : > { %v978_v36 = vmax.f32 %v914_v32, 0.0 }
 0x239   : > { %v1000_v37 = vpack.c.bf16 %v980_v34, %v979_v33 }
 0x23a   : > { %v999_v38 = vpack.c.bf16 %v978_v36, %v977_v35  ;;  %v1902_v39 = vpop.f32.mrb[12].mxu1 }
 0x23b   : > { %v935_v40 = vadd.f32 %v1902_v39, %v2536_v16  ;;  %v926_v41 = vpop.f32.mrb[13].mxu1 }
 0x23c   : > { %v927_v42 = vadd.f32 %v2536_v16, %v926_v41  ;;  %v1903_v43 = vpop.f32.mrb[14].mxu1  ;;  %1932 = vmatprep.mubr.msk.bf16.mxu1 %vm1028_vm1, %v999_v38 }
 0x23d   : > { %v938_v44 = vadd.f32 %v1903_v43, %v2536_v16  ;;  %v929_v45 = vpop.f32.mrb[15].mxu1  ;;  %1933 = vmatmul.mubr.msk.bf16.gmra.mrb[40].mxu1 %vm1028_vm1, %v1000_v37  ;;  %v983_v46 = vmax.f32 %v935_v40, 0.0 }
 0x23e   : > { %v930_v28 = vadd.f32 %v2536_v16, %v929_v45  ;;  %v981_v48 = vmax.f32 %v927_v42, 0.0 }
 0x23f   : > { %v984_v47 = vmax.f32 %v938_v44, 0.0 }
 0x240   : > { %v982_v49 = vmax.f32 %v930_v28, 0.0 }
 0x241   : > { %v1002_v50 = vpack.c.bf16 %v984_v47, %v983_v46 }
 0x242   : > { %v1001_v51 = vpack.c.bf16 %v982_v49, %v981_v48  ;;  %v1906_v52 = vpop.f32.mrb[16].mxu1 }
 0x243   : > { %v951_v53 = vadd.f32 %v1906_v52, %v2536_v16  ;;  %v942_v54 = vpop.f32.mrb[17].mxu1 }
 0x244   : > { %v943_v55 = vadd.f32 %v2536_v16, %v942_v54  ;;  %v1907_v56 = vpop.f32.mrb[18].mxu1  ;;  %1936 = vmatprep.mubr.msk.bf16.mxu1 %vm1028_vm1, %v1001_v51 }
 0x245   : > { %v954_v57 = vadd.f32 %v1907_v56, %v2536_v16  ;;  %v945_v58 = vpop.f32.mrb[19].mxu1  ;;  %1937 = vmatmul.mubr.msk.bf16.gmra.mrb[44].mxu1 %vm1028_vm1, %v1002_v50  ;;  %v987_v60 = vmax.f32 %v951_v53, 0.0 }
 0x246   : > { %v946_v59 = vadd.f32 %v2536_v16, %v945_v58  ;;  %v985_v62 = vmax.f32 %v943_v55, 0.0 }
 0x247   : > { %v988_v61 = vmax.f32 %v954_v57, 0.0 }
 0x248   : > { %v986_v63 = vmax.f32 %v946_v59, 0.0 }
 0x249   : > { %v1004_v0 = vpack.c.bf16 %v988_v61, %v987_v60 }
 0x24a   : > { %v1003_v1 = vpack.c.bf16 %v986_v63, %v985_v62 }
 0x24c   : > { %1940 = vmatprep.mubr.msk.bf16.mxu1 %vm1028_vm1, %v1003_v1 }
 0x24d   : > { %1941 = vmatmul.mubr.msk.bf16.gmra.mrb[48].mxu1 %vm1028_vm1, %v1004_v0 }
 0x2e8   : > { %v1914_v3 = vpop.f32.mrb[20].mxu1 }
 0x2e9   : > { %v2592_v4 = vadd.f32 %v1914_v3, %v2589_v2  ;;  %v1111_v16 = vpop.f32.mrb[21].mxu1 }
 0x2ea   : > { %v2595_v5 = vadd.f32 %v2589_v2, %v1111_v16  ;;  %v1915_v6 = vpop.f32.mrb[22].mxu1 }
 0x2eb   : > { %1242 = vmax.xlane.f32.xlu1 %v2592_v4  ;;  %v1114_v7 = vpop.f32.mrb[23].mxu1  ;;  %v2600_v8 = vadd.f32 %v1915_v6, %v2589_v2 }
 0x2ec   : > { %1238 = vmax.xlane.f32.xlu0 %v2595_v5  ;;  %v2603_v9 = vadd.f32 %v2589_v2, %v1114_v7 }
 0x2ef   : > { %1244 = vmax.xlane.f32.xlu1 %v2600_v8 }
 0x2f0   : > { %v1918_v10 = vpop.f32.mrb[24].mxu1  ;;  %1240 = vmax.xlane.f32.xlu0 %v2603_v9 }
 0x2f1   : > { %v2608_v11 = vadd.f32 %v1918_v10, %v2589_v2  ;;  %v1127_v12 = vpop.f32.mrb[25].mxu1 }
 0x2f2   : > { %v1919_v13 = vpop.f32.mrb[26].mxu1  ;;  %v2616_v17 = vadd.f32 %v2589_v2, %v1127_v12 }
 0x2f3   : > { %v2611_v14 = vadd.f32 %v1919_v13, %v2589_v2  ;;  %v1130_v15 = vpop.f32.mrb[27].mxu1 }
 0x2f4   : > { %1250 = vmax.xlane.f32.xlu0 %v2608_v11  ;;  %v2619_v18 = vadd.f32 %v2589_v2, %v1130_v15 }
 0x2f5   : > { %1252 = vmax.xlane.f32.xlu1 %v2611_v14 }
 0x2f8   : > { %v1922_v19 = vpop.f32.mrb[28].mxu1  ;;  %1246 = vmax.xlane.f32.xlu0 %v2616_v17 }
 0x2f9   : > { %v2623_v29 = vadd.f32 %v1922_v19, %v2589_v2  ;;  %v1143_v20 = vpop.f32.mrb[29].mxu1  ;;  %1248 = vmax.xlane.f32.xlu1 %v2619_v18 }
 0x2fa   : > { %v1923_v21 = vpop.f32.mrb[30].mxu1  ;;  %v2632_v24 = vadd.f32 %v2589_v2, %v1143_v20 }
 0x2fb   : > { %v2627_v22 = vadd.f32 %v1923_v21, %v2589_v2  ;;  %v1146_v23 = vpop.f32.mrb[31].mxu1 }
 0x2fc   : > { %1258 = vmax.xlane.f32.xlu0 %v2623_v29  ;;  %v2635_v25 = vadd.f32 %v2589_v2, %v1146_v23 }
 0x2fd   : > { %1260 = vmax.xlane.f32.xlu1 %v2627_v22 }
 0x300   : > { %v1926_v26 = vpop.f32.mrb[32].mxu1  ;;  %1254 = vmax.xlane.f32.xlu0 %v2632_v24 }
 0x301   : > { %v2639_v27 = vadd.f32 %v1926_v26, %v2589_v2  ;;  %v1159_v30 = vpop.f32.mrb[33].mxu1  ;;  %1256 = vmax.xlane.f32.xlu1 %v2635_v25 }
 0x302   : > { %v1927_v31 = vpop.f32.mrb[34].mxu1  ;;  %v2648_v34 = vadd.f32 %v2589_v2, %v1159_v30 }
 0x303   : > { %v2643_v32 = vadd.f32 %v1927_v31, %v2589_v2  ;;  %v1162_v33 = vpop.f32.mrb[35].mxu1 }
 0x304   : > { %1266 = vmax.xlane.f32.xlu0 %v2639_v27  ;;  %v2651_v35 = vadd.f32 %v2589_v2, %v1162_v33 }
 0x305   : > { %1268 = vmax.xlane.f32.xlu1 %v2643_v32 }
 0x308   : > { %v1930_v36 = vpop.f32.mrb[36].mxu1  ;;  %1262 = vmax.xlane.f32.xlu0 %v2648_v34 }
 0x309   : > { %v2655_v37 = vadd.f32 %v1930_v36, %v2589_v2  ;;  %v1175_v38 = vpop.f32.mrb[37].mxu1  ;;  %1264 = vmax.xlane.f32.xlu1 %v2651_v35 }
 0x30a   : > { %v1931_v39 = vpop.f32.mrb[38].mxu1  ;;  %v2664_v42 = vadd.f32 %v2589_v2, %v1175_v38 }
 0x30b   : > { %v2659_v40 = vadd.f32 %v1931_v39, %v2589_v2  ;;  %v1178_v41 = vpop.f32.mrb[39].mxu1 }
 0x30c   : > { %1274 = vmax.xlane.f32.xlu0 %v2655_v37  ;;  %v2667_v43 = vadd.f32 %v2589_v2, %v1178_v41 }
 0x30d   : > { %1276 = vmax.xlane.f32.xlu1 %v2659_v40 }
 0x310   : > { %v1934_v44 = vpop.f32.mrb[40].mxu1  ;;  %1270 = vmax.xlane.f32.xlu0 %v2664_v42 }
 0x311   : > { %v2671_v45 = vadd.f32 %v1934_v44, %v2589_v2  ;;  %v1191_v28 = vpop.f32.mrb[41].mxu1  ;;  %1272 = vmax.xlane.f32.xlu1 %v2667_v43 }
 0x312   : > { %v1935_v46 = vpop.f32.mrb[42].mxu1  ;;  %v2680_v49 = vadd.f32 %v2589_v2, %v1191_v28 }
 0x313   : > { %v2675_v47 = vadd.f32 %v1935_v46, %v2589_v2  ;;  %v1194_v48 = vpop.f32.mrb[43].mxu1 }
 0x314   : > { %1282 = vmax.xlane.f32.xlu0 %v2671_v45  ;;  %v2683_v50 = vadd.f32 %v2589_v2, %v1194_v48 }
 0x315   : > { %1284 = vmax.xlane.f32.xlu1 %v2675_v47 }
 0x318   : > { %v1938_v51 = vpop.f32.mrb[44].mxu1  ;;  %1278 = vmax.xlane.f32.xlu0 %v2680_v49 }
 0x319   : > { %v2687_v52 = vadd.f32 %v1938_v51, %v2589_v2  ;;  %v1207_v53 = vpop.f32.mrb[45].mxu1  ;;  %1280 = vmax.xlane.f32.xlu1 %v2683_v50 }
 0x31a   : > { %v1939_v54 = vpop.f32.mrb[46].mxu1  ;;  %v2696_v57 = vadd.f32 %v2589_v2, %v1207_v53 }
 0x31b   : > { %v2691_v55 = vadd.f32 %v1939_v54, %v2589_v2  ;;  %v1210_v56 = vpop.f32.mrb[47].mxu1 }
 0x31c   : > { %1290 = vmax.xlane.f32.xlu0 %v2687_v52  ;;  %v2699_v58 = vadd.f32 %v2589_v2, %v1210_v56 }
 0x31d   : > { %1292 = vmax.xlane.f32.xlu1 %v2691_v55 }
 0x320   : > { %v1942_v59 = vpop.f32.mrb[48].mxu1  ;;  %1286 = vmax.xlane.f32.xlu0 %v2696_v57 }
 0x321   : > { %v1223_v60 = vpop.f32.mrb[49].mxu1  ;;  %1288 = vmax.xlane.f32.xlu1 %v2699_v58  ;;  %v2711_v1 = vadd.f32 %v1942_v59, %v2589_v2 }
 0x322   : > { %v2704_v61 = vadd.f32 %v2589_v2, %v1223_v60  ;;  %v1943_v62 = vpop.f32.mrb[50].mxu1 }
 0x323   : > { %v1226_v63 = vpop.f32.mrb[51].mxu1  ;;  %v2715_v3 = vadd.f32 %v1943_v62, %v2589_v2 }
 0x324   : > { %v2707_v0 = vadd.f32 %v2589_v2, %v1226_v63  ;;  %1294 = vmax.xlane.f32.xlu0 %v2704_v61 }
 0x326   : > { %1296 = vmax.xlane.f32.xlu1 %v2707_v0 }
 0x328   : > { %1298 = vmax.xlane.f32.xlu0 %v2711_v1 }
 0x32a   : > { %1300 = vmax.xlane.f32.xlu1 %v2715_v3 }
 0x378   : > { %v1243_v16 = vpop.xlane.xlu1 %1242 }
 0x379   : > { %v2720_v6 = vsub.f32 %v2592_v4, %v1243_v16  ;;  %v1239_v7 = vpop.xlane.xlu0 %1238 }
 0x37a   : > { %v2723_v10 = vsub.f32 %v2595_v5, %v1239_v7 }
 0x37b   : > { %v1338_v12 = vmul.f32 1.442695, %v2720_v6 }
 0x37c   : > { %v1334_v13 = vmul.f32 1.442695, %v2723_v10  ;;  %v1245_v15 = vpop.xlane.xlu1 %1244 }
 0x37d   : > { %2032 = vpow2.f32 %v1338_v12  ;;  %v2728_v2 = vsub.f32 %v2600_v8, %v1245_v15  ;;  %v1241_v19 = vpop.xlane.xlu0 %1240 }
 0x37e   : > { %v2731_v20 = vsub.f32 %v2603_v9, %v1241_v19  ;;  %2034 = vpow2.f32 %v1334_v13 }
 0x37f   : > { %v1340_v4 = vmul.f32 1.442695, %v2728_v2 }
 0x380   : > { %v1336_v5 = vmul.f32 1.442695, %v2731_v20 }
 0x381   : > { %2036 = vpow2.f32 %v1340_v4  ;;  %v1251_v21 = vpop.xlane.xlu0 %1250 }
 0x382   : > { %v2736_v23 = vsub.f32 %v2608_v11, %v1251_v21  ;;  %v1253_v26 = vpop.xlane.xlu1 %1252  ;;  %2038 = vpow2.f32 %v1336_v5 }
 0x383   : > { %v2739_v30 = vsub.f32 %v2611_v14, %v1253_v26 }
 0x384   : > { %v1346_v8 = vmul.f32 1.442695, %v2736_v23 }
 0x385   : > { %v1348_v9 = vmul.f32 1.442695, %v2739_v30  ;;  %v1247_v31 = vpop.xlane.xlu0 %1246 }
 0x386   : > { %2040 = vpow2.f32 %v1346_v8  ;;  %v2744_v33 = vsub.f32 %v2616_v17, %v1247_v31  ;;  %v1249_v36 = vpop.xlane.xlu1 %1248 }
 0x387   : > { %v2033_v38 = vpop.eup %2032  ;;  %v2747_v39 = vsub.f32 %v2619_v18, %v1249_v36  ;;  %2042 = vpow2.f32 %v1348_v9 }
 0x388   : > { %v1342_v11 = vmul.f32 1.442695, %v2744_v33  ;;  %1402 = vadd.xlane.f32.xlu0 %v2033_v38  ;;  %v2035_v44 = vpop.eup %2034 }
 0x389   : > { %v1344_v14 = vmul.f32 1.442695, %v2747_v39  ;;  %v1259_v41 = vpop.xlane.xlu0 %1258 }
 0x38a   : > { %2044 = vpow2.f32 %v1342_v11  ;;  %v2752_v28 = vsub.f32 %v2623_v29, %v1259_v41  ;;  %v1261_v46 = vpop.xlane.xlu1 %1260 }
 0x38b   : > { %v2037_v17 = vpop.eup %2036  ;;  %v2755_v48 = vsub.f32 %v2627_v22, %v1261_v46  ;;  %2046 = vpow2.f32 %v1344_v14 }
 0x38c   : > { %v1354_v18 = vmul.f32 1.442695, %v2752_v28  ;;  %1404 = vadd.xlane.f32.xlu1 %v2037_v17  ;;  %1398 = vadd.xlane.f32.xlu0 %v2035_v44  ;;  %v2039_v29 = vpop.eup %2038 }
 0x38d   : > { %v1356_v51 = vmul.f32 1.442695, %v2755_v48  ;;  %v1255_v53 = vpop.xlane.xlu0 %1254 }
 0x38e   : > { %2048 = vpow2.f32 %v1354_v18  ;;  %v2760_v54 = vsub.f32 %v2632_v24, %v1255_v53  ;;  %v1257_v56 = vpop.xlane.xlu1 %1256 }
 0x38f   : > { %v2763_v59 = vsub.f32 %v2635_v25, %v1257_v56  ;;  %2050 = vpow2.f32 %v1356_v51 }
 0x390   : > { %v2041_v60 = vpop.eup %2040  ;;  %v1350_v22 = vmul.f32 1.442695, %v2760_v54  ;;  %1400 = vadd.xlane.f32.xlu1 %v2039_v29 }
 0x391   : > { %v1352_v62 = vmul.f32 1.442695, %v2763_v59  ;;  %1410 = vadd.xlane.f32.xlu0 %v2041_v60  ;;  %v1267_v63 = vpop.xlane.xlu0 %1266  ;;  %v2043_v7 = vpop.eup %2042 }
 0x392   : > { %2052 = vpow2.f32 %v1350_v22  ;;  %v2768_v16 = vsub.f32 %v2639_v27, %v1267_v63  ;;  %v1269_v24 = vpop.xlane.xlu1 %1268 }
 0x393   : > { %v2771_v12 = vsub.f32 %v2643_v32, %v1269_v24  ;;  %2054 = vpow2.f32 %v1352_v62 }
 0x394   : > { %v2045_v25 = vpop.eup %2044  ;;  %v1362_v13 = vmul.f32 1.442695, %v2768_v16  ;;  %1412 = vadd.xlane.f32.xlu1 %v2043_v7 }
 0x395   : > { %v1364_v15 = vmul.f32 1.442695, %v2771_v12  ;;  %1406 = vadd.xlane.f32.xlu0 %v2045_v25  ;;  %v1263_v19 = vpop.xlane.xlu0 %1262  ;;  %v2047_v5 = vpop.eup %2046 }
 0x396   : > { %2056 = vpow2.f32 %v1362_v13  ;;  %v2776_v4 = vsub.f32 %v2648_v34, %v1263_v19  ;;  %v1265_v27 = vpop.xlane.xlu1 %1264 }
 0x397   : > { %v2779_v21 = vsub.f32 %v2651_v35, %v1265_v27  ;;  %2058 = vpow2.f32 %v1364_v15 }
 0x398   : > { %v2049_v32 = vpop.eup %2048  ;;  %v1358_v26 = vmul.f32 1.442695, %v2776_v4  ;;  %1408 = vadd.xlane.f32.xlu1 %v2047_v5 }
 0x399   : > { %v1360_v8 = vmul.f32 1.442695, %v2779_v21  ;;  %1418 = vadd.xlane.f32.xlu0 %v2049_v32  ;;  %v1275_v9 = vpop.xlane.xlu0 %1274  ;;  %v2051_v36 = vpop.eup %2050 }
 0x39a   : > { %2060 = vpow2.f32 %v1358_v26  ;;  %v2784_v31 = vsub.f32 %v2655_v37, %v1275_v9  ;;  %v1277_v34 = vpop.xlane.xlu1 %1276 }
 0x39b   : > { %v2787_v38 = vsub.f32 %v2659_v40, %v1277_v34  ;;  %2062 = vpow2.f32 %v1360_v8 }
 0x39c   : > { %v2053_v35 = vpop.eup %2052  ;;  %v1370_v11 = vmul.f32 1.442695, %v2784_v31  ;;  %1420 = vadd.xlane.f32.xlu1 %v2051_v36 }
 0x39d   : > { %v1372_v14 = vmul.f32 1.442695, %v2787_v38  ;;  %1414 = vadd.xlane.f32.xlu0 %v2053_v35  ;;  %v1271_v41 = vpop.xlane.xlu0 %1270  ;;  %v2055_v46 = vpop.eup %2054 }
 0x39e   : > { %2064 = vpow2.f32 %v1370_v11  ;;  %v2792_v44 = vsub.f32 %v2664_v42, %v1271_v41  ;;  %v1273_v37 = vpop.xlane.xlu1 %1272 }
 0x39f   : > { %v2795_v17 = vsub.f32 %v2667_v43, %v1273_v37  ;;  %2066 = vpow2.f32 %v1372_v14 }
 0x3a0   : > { %v2057_v40 = vpop.eup %2056  ;;  %v1366_v18 = vmul.f32 1.442695, %v2792_v44  ;;  %1416 = vadd.xlane.f32.xlu1 %v2055_v46 }
 0x3a1   : > { %v1368_v51 = vmul.f32 1.442695, %v2795_v17  ;;  %1426 = vadd.xlane.f32.xlu0 %v2057_v40  ;;  %v1283_v53 = vpop.xlane.xlu0 %1282  ;;  %v2059_v29 = vpop.eup %2058 }
 0x3a2   : > { %2068 = vpow2.f32 %v1366_v18  ;;  %v2800_v56 = vsub.f32 %v2671_v45, %v1283_v53  ;;  %v1285_v42 = vpop.xlane.xlu1 %1284 }
 0x3a3   : > { %v2803_v60 = vsub.f32 %v2675_v47, %v1285_v42  ;;  %2070 = vpow2.f32 %v1368_v51 }
 0x3a4   : > { %v2061_v43 = vpop.eup %2060  ;;  %v1378_v22 = vmul.f32 1.442695, %v2800_v56  ;;  %1428 = vadd.xlane.f32.xlu1 %v2059_v29 }
 0x3a5   : > { %v1380_v62 = vmul.f32 1.442695, %v2803_v60  ;;  %1422 = vadd.xlane.f32.xlu0 %v2061_v43  ;;  %v1279_v63 = vpop.xlane.xlu0 %1278  ;;  %v2063_v7 = vpop.eup %2062 }
 0x3a6   : > { %2072 = vpow2.f32 %v1378_v22  ;;  %v2808_v24 = vsub.f32 %v2680_v49, %v1279_v63  ;;  %v1281_v45 = vpop.xlane.xlu1 %1280 }
 0x3a7   : > { %v2811_v25 = vsub.f32 %v2683_v50, %v1281_v45  ;;  %2074 = vpow2.f32 %v1380_v62 }
 0x3a8   : > { %v2065_v47 = vpop.eup %2064  ;;  %v1374_v13 = vmul.f32 1.442695, %v2808_v24  ;;  %1424 = vadd.xlane.f32.xlu1 %v2063_v7 }
 0x3a9   : > { %v1376_v15 = vmul.f32 1.442695, %v2811_v25  ;;  %1434 = vadd.xlane.f32.xlu0 %v2065_v47  ;;  %v1291_v19 = vpop.xlane.xlu0 %1290  ;;  %v2067_v5 = vpop.eup %2066 }
 0x3aa   : > { %2076 = vpow2.f32 %v1374_v13  ;;  %v2816_v27 = vsub.f32 %v2687_v52, %v1291_v19  ;;  %v1293_v49 = vpop.xlane.xlu1 %1292 }
 0x3ab   : > { %v2819_v32 = vsub.f32 %v2691_v55, %v1293_v49  ;;  %2078 = vpow2.f32 %v1376_v15 }
 0x3ac   : > { %v2069_v50 = vpop.eup %2068  ;;  %v1386_v26 = vmul.f32 1.442695, %v2816_v27  ;;  %1436 = vadd.xlane.f32.xlu1 %v2067_v5 }
 0x3ad   : > { %v1388_v8 = vmul.f32 1.442695, %v2819_v32  ;;  %1430 = vadd.xlane.f32.xlu0 %v2069_v50  ;;  %v1287_v9 = vpop.xlane.xlu0 %1286  ;;  %v2071_v36 = vpop.eup %2070 }
 0x3ae   : > { %2080 = vpow2.f32 %v1386_v26  ;;  %v2824_v34 = vsub.f32 %v2696_v57, %v1287_v9  ;;  %v1289_v52 = vpop.xlane.xlu1 %1288 }
 0x3af   : > { %v2827_v35 = vsub.f32 %v2699_v58, %v1289_v52  ;;  %2082 = vpow2.f32 %v1388_v8 }
 0x3b0   : > { %v2073_v55 = vpop.eup %2072  ;;  %v1382_v11 = vmul.f32 1.442695, %v2824_v34  ;;  %1432 = vadd.xlane.f32.xlu1 %v2071_v36 }
 0x3b1   : > { %v1384_v14 = vmul.f32 1.442695, %v2827_v35  ;;  %1442 = vadd.xlane.f32.xlu0 %v2073_v55  ;;  %v1295_v41 = vpop.xlane.xlu0 %1294  ;;  %v2075_v57 = vpop.eup %2074 }
 0x3b2   : > { %2084 = vpow2.f32 %v1382_v11  ;;  %v2832_v37 = vsub.f32 %v2704_v61, %v1295_v41 }
 0x3b3   : > { %v1297_v46 = vpop.xlane.xlu1 %1296  ;;  %2086 = vpow2.f32 %v1384_v14 }
 0x3b4   : > { %v2077_v40 = vpop.eup %2076  ;;  %v1390_v18 = vmul.f32 1.442695, %v2832_v37  ;;  %v2836_v58 = vsub.f32 %v2707_v0, %v1297_v46  ;;  %1444 = vadd.xlane.f32.xlu1 %v2075_v57 }
 0x3b5   : > { %1438 = vadd.xlane.f32.xlu0 %v2077_v40  ;;  %v1299_v51 = vpop.xlane.xlu0 %1298  ;;  %v2079_v61 = vpop.eup %2078 }
 0x3b6   : > { %2088 = vpow2.f32 %v1390_v18  ;;  %v1392_v53 = vmul.f32 1.442695, %v2836_v58  ;;  %v2840_v42 = vsub.f32 %v2711_v1, %v1299_v51 }
 0x3b7   : > { %v1301_v29 = vpop.xlane.xlu1 %1300 }
 0x3b8   : > { %v2081_v43 = vpop.eup %2080  ;;  %2090 = vpow2.f32 %v1392_v53  ;;  %v1394_v22 = vmul.f32 1.442695, %v2840_v42  ;;  %v2844_v62 = vsub.f32 %v2715_v3, %v1301_v29  ;;  %1440 = vadd.xlane.f32.xlu1 %v2079_v61 }
 0x3b9   : > { %1450 = vadd.xlane.f32.xlu0 %v2081_v43  ;;  %v2083_v63 = vpop.eup %2082 }
 0x3ba   : > { %2092 = vpow2.f32 %v1394_v22  ;;  %v1396_v0 = vmul.f32 1.442695, %v2844_v62 }
 0x3bc   : > { %v2085_v45 = vpop.eup %2084  ;;  %2094 = vpow2.f32 %v1396_v0  ;;  %1452 = vadd.xlane.f32.xlu1 %v2083_v63 }
 0x3bd   : > { %1446 = vadd.xlane.f32.xlu0 %v2085_v45  ;;  %v2087_v1 = vpop.eup %2086 }
 0x3c0   : > { %v2089_v7 = vpop.eup %2088  ;;  %1448 = vadd.xlane.f32.xlu1 %v2087_v1 }
 0x3c1   : > { %1454 = vadd.xlane.f32.xlu0 %v2089_v7 }
 0x3c2   : > { %v2091_v47 = vpop.eup %2090 }
 0x3c4   : > { %v2093_v13 = vpop.eup %2092  ;;  %1456 = vadd.xlane.f32.xlu1 %v2091_v47 }
 0x3c5   : > { %1458 = vadd.xlane.f32.xlu0 %v2093_v13 }
 0x3c6   : > { %v2095_v3 = vpop.eup %2094 }
 0x3c8   : > { %1460 = vadd.xlane.f32.xlu1 %v2095_v3 }
 0x415   : > { %v1403_v15 = vpop.xlane.xlu0 %1402 }
 0x416   : > { %2096 = vlog2.f32 %v1403_v15 }
 0x419   : > { %v1405_v19 = vpop.xlane.xlu1 %1404  ;;  %v1399_v49 = vpop.xlane.xlu0 %1398 }
 0x41a   : > { %2098 = vlog2.f32 %v1405_v19 }
 0x41b   : > { %2100 = vlog2.f32 %v1399_v49 }
 0x41d   : > { %v1401_v5 = vpop.xlane.xlu1 %1400 }
 0x41e   : > { %2102 = vlog2.f32 %v1401_v5  ;;  %v1411_v50 = vpop.xlane.xlu0 %1410 }
 0x41f   : > { %2104 = vlog2.f32 %v1411_v50 }
 0x420   : > { %v2097_v26 = vpop.eup %2096 }
 0x421   : > { %v1467_v8 = vmul.f32 0.6931472, %v2097_v26  ;;  %v1413_v9 = vpop.xlane.xlu1 %1412 }
 0x422   : > { %2106 = vlog2.f32 %v1413_v9  ;;  %v1407_v52 = vpop.xlane.xlu0 %1406 }
 0x423   : > { %v1528_v36 = vsub.f32 %v2720_v6, %v1467_v8  ;;  %2108 = vlog2.f32 %v1407_v52 }
 0x424   : > { %v2099_v55 = vpop.eup %2098 }
 0x425   : > { %v2101_v11 = vpop.eup %2100  ;;  %1560 = vst [vmem:[%s2849_s17 + $0x10] sm:$0xff] %v1528_v36  ;;  %v1469_v14 = vmul.f32 0.6931472, %v2099_v55  ;;  %v1409_v41 = vpop.xlane.xlu1 %1408 }
 0x426   : > { %v1463_v57 = vmul.f32 0.6931472, %v2101_v11  ;;  %2110 = vlog2.f32 %v1409_v41  ;;  %v1419_v46 = vpop.xlane.xlu0 %1418 }
 0x427   : > { %v1529_v40 = vsub.f32 %v2728_v2, %v1469_v14  ;;  %2112 = vlog2.f32 %v1419_v46 }
 0x428   : > { %v2103_v18 = vpop.eup %2102  ;;  %v1526_v6 = vsub.f32 %v2723_v10, %v1463_v57 }
 0x429   : > { %v2105_v51 = vpop.eup %2104  ;;  %1561 = vst [vmem:[%s2849_s17 + $0x18] sm:$0xff] %v1529_v40  ;;  %v1465_v53 = vmul.f32 0.6931472, %v2103_v18  ;;  %v1421_v61 = vpop.xlane.xlu1 %1420 }
 0x42a   : > { %1558 = vst [vmem:[%s2849_s17] sm:$0xff] %v1526_v6  ;;  %v1475_v29 = vmul.f32 0.6931472, %v2105_v51  ;;  %2114 = vlog2.f32 %v1421_v61  ;;  %v1415_v43 = vpop.xlane.xlu0 %1414 }
 0x42b   : > { %v1527_v22 = vsub.f32 %v2731_v20, %v1465_v53  ;;  %2116 = vlog2.f32 %v1415_v43 }
 0x42c   : > { %v2107_v0 = vpop.eup %2106  ;;  %v1532_v2 = vsub.f32 %v2736_v23, %v1475_v29 }
 0x42d   : > { %v2109_v63 = vpop.eup %2108  ;;  %1559 = vst [vmem:[%s2849_s17 + $0x8] sm:$0xff] %v1527_v22  ;;  %v1477_v10 = vmul.f32 0.6931472, %v2107_v0  ;;  %v1417_v45 = vpop.xlane.xlu1 %1416 }
 0x42e   : > { %1564 = vst [vmem:[%s2849_s17 + $0x30] sm:$0xff] %v1532_v2  ;;  %v1471_v1 = vmul.f32 0.6931472, %v2109_v63  ;;  %2118 = vlog2.f32 %v1417_v45  ;;  %v1427_v7 = vpop.xlane.xlu0 %1426 }
 0x42f   : > { %v1533_v47 = vsub.f32 %v2739_v30, %v1477_v10  ;;  %2120 = vlog2.f32 %v1427_v7 }
 0x430   : > { %v2111_v13 = vpop.eup %2110  ;;  %v1530_v20 = vsub.f32 %v2744_v33, %v1471_v1 }
 0x431   : > { %v2113_v3 = vpop.eup %2112  ;;  %1565 = vst [vmem:[%s2849_s17 + $0x38] sm:$0xff] %v1533_v47  ;;  %v1473_v23 = vmul.f32 0.6931472, %v2111_v13  ;;  %v1429_v15 = vpop.xlane.xlu1 %1428 }
 0x432   : > { %1562 = vst [vmem:[%s2849_s17 + $0x20] sm:$0xff] %v1530_v20  ;;  %v1483_v19 = vmul.f32 0.6931472, %v2113_v3  ;;  %2122 = vlog2.f32 %v1429_v15  ;;  %v1423_v49 = vpop.xlane.xlu0 %1422 }
 0x433   : > { %v1531_v5 = vsub.f32 %v2747_v39, %v1473_v23  ;;  %2124 = vlog2.f32 %v1423_v49 }
 0x434   : > { %v2115_v50 = vpop.eup %2114  ;;  %v1536_v30 = vsub.f32 %v2752_v28, %v1483_v19 }
 0x435   : > { %v2117_v26 = vpop.eup %2116  ;;  %1563 = vst [vmem:[%s2849_s17 + $0x28] sm:$0xff] %v1531_v5  ;;  %v1485_v33 = vmul.f32 0.6931472, %v2115_v50  ;;  %v1425_v8 = vpop.xlane.xlu1 %1424 }
 0x436   : > { %1568 = vst [vmem:[%s2849_s17 + $0x50] sm:$0xff] %v1536_v30  ;;  %v1479_v9 = vmul.f32 0.6931472, %v2117_v26  ;;  %2126 = vlog2.f32 %v1425_v8  ;;  %v1435_v52 = vpop.xlane.xlu0 %1434 }
 0x437   : > { %v1537_v36 = vsub.f32 %v2755_v48, %v1485_v33  ;;  %2128 = vlog2.f32 %v1435_v52 }
 0x438   : > { %v2119_v55 = vpop.eup %2118  ;;  %v1534_v39 = vsub.f32 %v2760_v54, %v1479_v9 }
 0x439   : > { %v2121_v11 = vpop.eup %2120  ;;  %1569 = vst [vmem:[%s2849_s17 + $0x58] sm:$0xff] %v1537_v36  ;;  %v1481_v28 = vmul.f32 0.6931472, %v2119_v55  ;;  %v1437_v14 = vpop.xlane.xlu1 %1436 }
 0x43a   : > { %1566 = vst [vmem:[%s2849_s17 + $0x40] sm:$0xff] %v1534_v39  ;;  %v1491_v41 = vmul.f32 0.6931472, %v2121_v11  ;;  %2130 = vlog2.f32 %v1437_v14  ;;  %v1431_v57 = vpop.xlane.xlu0 %1430 }
 0x43b   : > { %v1535_v46 = vsub.f32 %v2763_v59, %v1481_v28  ;;  %2132 = vlog2.f32 %v1431_v57 }
 0x43c   : > { %v2123_v40 = vpop.eup %2122  ;;  %v1540_v48 = vsub.f32 %v2768_v16, %v1491_v41 }
 0x43d   : > { %v2125_v18 = vpop.eup %2124  ;;  %1567 = vst [vmem:[%s2849_s17 + $0x48] sm:$0xff] %v1535_v46  ;;  %v1493_v54 = vmul.f32 0.6931472, %v2123_v40  ;;  %v1433_v6 = vpop.xlane.xlu1 %1432 }
 0x43e   : > { %1572 = vst [vmem:[%s2849_s17 + $0x70] sm:$0xff] %v1540_v48  ;;  %v1487_v51 = vmul.f32 0.6931472, %v2125_v18  ;;  %2134 = vlog2.f32 %v1433_v6  ;;  %v1443_v53 = vpop.xlane.xlu0 %1442 }
 0x43f   : > { %v1541_v61 = vsub.f32 %v2771_v12, %v1493_v54  ;;  %2136 = vlog2.f32 %v1443_v53 }
 0x440   : > { %v2127_v29 = vpop.eup %2126  ;;  %v1538_v59 = vsub.f32 %v2776_v4, %v1487_v51 }
 0x441   : > { %v2129_v43 = vpop.eup %2128  ;;  %1573 = vst [vmem:[%s2849_s17 + $0x78] sm:$0xff] %v1541_v61  ;;  %v1489_v16 = vmul.f32 0.6931472, %v2127_v29  ;;  %v1445_v22 = vpop.xlane.xlu1 %1444 }
 0x442   : > { %1570 = vst [vmem:[%s2849_s17 + $0x60] sm:$0xff] %v1538_v59  ;;  %v1499_v0 = vmul.f32 0.6931472, %v2129_v43  ;;  %2138 = vlog2.f32 %v1445_v22  ;;  %v1439_v2 = vpop.xlane.xlu0 %1438 }
 0x443   : > { %v1539_v63 = vsub.f32 %v2779_v21, %v1489_v16  ;;  %2140 = vlog2.f32 %v1439_v2 }
 0x444   : > { %v2131_v10 = vpop.eup %2130  ;;  %v1544_v12 = vsub.f32 %v2784_v31, %v1499_v0 }
 0x445   : > { %v2133_v45 = vpop.eup %2132  ;;  %1571 = vst [vmem:[%s2849_s17 + $0x68] sm:$0xff] %v1539_v63  ;;  %v1501_v4 = vmul.f32 0.6931472, %v2131_v10  ;;  %v1441_v1 = vpop.xlane.xlu1 %1440 }
 0x446   : > { %1576 = vst [vmem:[%s2849_s17 + $0x90] sm:$0xff] %v1544_v12  ;;  %v1495_v7 = vmul.f32 0.6931472, %v2133_v45  ;;  %2142 = vlog2.f32 %v1441_v1  ;;  %v1451_v47 = vpop.xlane.xlu0 %1450 }
 0x447   : > { %v1545_v13 = vsub.f32 %v2787_v38, %v1501_v4  ;;  %2144 = vlog2.f32 %v1451_v47 }
 0x448   : > { %v2135_v20 = vpop.eup %2134  ;;  %v1542_v21 = vsub.f32 %v2792_v44, %v1495_v7 }
 0x449   : > { %v2137_v3 = vpop.eup %2136  ;;  %1577 = vst [vmem:[%s2849_s17 + $0x98] sm:$0xff] %v1545_v13  ;;  %v1497_v31 = vmul.f32 0.6931472, %v2135_v20  ;;  %v1453_v23 = vpop.xlane.xlu1 %1452 }
 0x44a   : > { %1574 = vst [vmem:[%s2849_s17 + $0x80] sm:$0xff] %v1542_v21  ;;  %v1507_v15 = vmul.f32 0.6931472, %v2137_v3  ;;  %2146 = vlog2.f32 %v1453_v23  ;;  %v1447_v19 = vpop.xlane.xlu0 %1446 }
 0x44b   : > { %v1543_v49 = vsub.f32 %v2795_v17, %v1497_v31  ;;  %2148 = vlog2.f32 %v1447_v19 }
 0x44c   : > { %v2139_v5 = vpop.eup %2138  ;;  %v1548_v38 = vsub.f32 %v2800_v56, %v1507_v15 }
 0x44d   : > { %v2141_v50 = vpop.eup %2140  ;;  %1575 = vst [vmem:[%s2849_s17 + $0x88] sm:$0xff] %v1543_v49  ;;  %v1509_v44 = vmul.f32 0.6931472, %v2139_v5  ;;  %v1449_v30 = vpop.xlane.xlu1 %1448 }
 0x44e   : > { %1580 = vst [vmem:[%s2849_s17 + $0xb0] sm:$0xff] %v1548_v38  ;;  %v1503_v26 = vmul.f32 0.6931472, %v2141_v50  ;;  %2150 = vlog2.f32 %v1449_v30  ;;  %v1455_v33 = vpop.xlane.xlu0 %1454 }
 0x44f   : > { %v1549_v8 = vsub.f32 %v2803_v60, %v1509_v44  ;;  %2152 = vlog2.f32 %v1455_v33 }
 0x450   : > { %v2143_v9 = vpop.eup %2142  ;;  %v1546_v17 = vsub.f32 %v2808_v24, %v1503_v26 }
 0x451   : > { %v2145_v52 = vpop.eup %2144  ;;  %1581 = vst [vmem:[%s2849_s17 + $0xb8] sm:$0xff] %v1549_v8  ;;  %v1505_v56 = vmul.f32 0.6931472, %v2143_v9  ;;  %v1457_v36 = vpop.xlane.xlu1 %1456 }
 0x452   : > { %1578 = vst [vmem:[%s2849_s17 + $0xa0] sm:$0xff] %v1546_v17  ;;  %v1515_v55 = vmul.f32 0.6931472, %v2145_v52  ;;  %2154 = vlog2.f32 %v1457_v36  ;;  %v1459_v39 = vpop.xlane.xlu0 %1458 }
 0x453   : > { %v1547_v11 = vsub.f32 %v2811_v25, %v1505_v56  ;;  %2156 = vlog2.f32 %v1459_v39 }
 0x454   : > { %v2147_v60 = vpop.eup %2146  ;;  %v1552_v28 = vsub.f32 %v2816_v27, %v1515_v55 }
 0x455   : > { %v2149_v14 = vpop.eup %2148  ;;  %1579 = vst [vmem:[%s2849_s17 + $0xa8] sm:$0xff] %v1547_v11  ;;  %v1517_v24 = vmul.f32 0.6931472, %v2147_v60  ;;  %v1461_v41 = vpop.xlane.xlu1 %1460 }
 0x456   : > { %1584 = vst [vmem:[%s2849_s17 + $0xd0] sm:$0xff] %v1552_v28  ;;  %v1511_v57 = vmul.f32 0.6931472, %v2149_v14  ;;  %2158 = vlog2.f32 %v1461_v41 }
 0x457   : > { %v1553_v46 = vsub.f32 %v2819_v32, %v1517_v24 }
 0x458   : > { %v2151_v40 = vpop.eup %2150  ;;  %v1550_v25 = vsub.f32 %v2824_v34, %v1511_v57 }
 0x459   : > { %v2153_v48 = vpop.eup %2152  ;;  %1585 = vst [vmem:[%s2849_s17 + $0xd8] sm:$0xff] %v1553_v46  ;;  %v1513_v18 = vmul.f32 0.6931472, %v2151_v40 }
 0x45a   : > { %1582 = vst [vmem:[%s2849_s17 + $0xc0] sm:$0xff] %v1550_v25  ;;  %v1519_v27 = vmul.f32 0.6931472, %v2153_v48 }
 0x45b   : > { %v1551_v54 = vsub.f32 %v2827_v35, %v1513_v18 }
 0x45c   : > { %v2155_v6 = vpop.eup %2154  ;;  %v1554_v51 = vsub.f32 %v2832_v37, %v1519_v27 }
 0x45d   : > { %v2157_v53 = vpop.eup %2156  ;;  %1583 = vst [vmem:[%s2849_s17 + $0xc8] sm:$0xff] %v1551_v54  ;;  %v1521_v32 = vmul.f32 0.6931472, %v2155_v6 }
 0x45e   : > { %1586 = vst [vmem:[%s2849_s17 + $0xe0] sm:$0xff] %v1554_v51  ;;  %v1523_v34 = vmul.f32 0.6931472, %v2157_v53 }
 0x45f   : > { %v1555_v61 = vsub.f32 %v2836_v58, %v1521_v32 }
 0x460   : > { %v2159_v29 = vpop.eup %2158  ;;  %v1556_v59 = vsub.f32 %v2840_v42, %v1523_v34 }
 0x461   : > { %1587 = vst [vmem:[%s2849_s17 + $0xe8] sm:$0xff] %v1555_v61  ;;  %v1525_v35 = vmul.f32 0.6931472, %v2159_v29 }
 0x462   : > { %1588 = vst [vmem:[%s2849_s17 + $0xf0] sm:$0xff] %v1556_v59 }
 0x463   : > { %v1557_v37 = vsub.f32 %v2844_v62, %v1525_v35 }
 0x465   : > { %1589 = vst [vmem:[%s2849_s17 + $0xf8] sm:$0xff] %v1557_v37 }
 0x466   : > { %2203 = shalt.err (!%p2200_p2)
}
 0x467   : > { %s2204_s12 = scalar_lea.hbm %s2917_s29, 4096  ;;  %s2208_s17 = scalar_lea.hbm %s2972_s7, 8192 }
 0x468   : > { %p2205_p4 = scmp.ne.s32.totalorder %s2917_s29, %s2204_s12  ;;  %p2209_p9 = scmp.lt.u32.totalorder %s2917_s29, %s2972_s7 }
 0x469   : > { %p2210_p1 = scmp.lt.u32.totalorder %s2208_s17, %s2204_s12  ;;  %p2212_p6 = scmp.lt.u32.totalorder %s2204_s12, %s2917_s29 }
 0x46a   : > { %p2206_p5 = pnand %p2205_p4, %p2979_p11 }
 0x46b   : > { %p2211_p3 = por %p2210_p1, %p2209_p9 }
 0x46c   : > { %p2207_p7 = pneg %p2206_p5 }
 0x46d   : > { %p2213_p12 = por %p2212_p6, %p2211_p3 }
 0x46f   : > { %p2214_p13 = pnand %p2213_p12, %p2207_p7 }
 0x471   : > { %2217 = shalt.err (!%p2214_p13)
}
 0x472   : > { %s2262_s23 = smov 128   ;;  %s2263_s15 = smov 8  }
 0x473   : > { %1954 = dma.vmem_to_hbm [thread:$0]  (%p2979_p11), %s2919_s20, 4096, %s2917_s29, %s1591_s28, %s2262_s23, %s2262_s23, %s2263_s15  }
 0x474 PF: > { %s1619_s19 = sand.u32 1, %s2244_s24   ;;  %p2980_p8 = scmp.ne.s32.totalorder %s2977_s14, 0 }
 0x475   : > { %p2981_p10 = scmp.ge.s32.totalorder %s2256_s27, 2  ;;  %s1620_s21 = scalar_lea.sflag [#allocation4], %s1619_s19 }
 0x477   : > { %p1961_p0 = pnand %p2981_p10, %p2980_p8 }
 0x479   : > { %2239 = dma.done.wait (!%p1961_p0), %s1620_s21, 4096  }
 0x47a   : > { %2241 = vsyncadd (!%p1961_p0), %s1620_s21, 4294963200  ;;  %p20_p2 = scmp.ge.s32.totalorder %s2329_s30, 4   ;;  %s2982_s24 = smov %s2248_s25 }
 0x47b   : > { %s2983_s25 = smov %s2252_s26  ;;  %s2984_s26 = smov %s2341_s10 }
 0x47c   : > { %s2985_s27 = smov %s2329_s30  ;;  %22 = sbr.rel (!%p20_p2) target bundleno = 5 (0x5), region = 93 }
 0x483   :  { %1625 = vsyncpa [#allocation3], 1 }
 0x484   :  { %1627 = vsyncpa [#allocation3 + $0x1], 1 }
 0x485   :  { %1628 = vsyncpa [#allocation4], 1 }
 0x486   :  { %1630 = vsyncpa [#allocation4 + $0x1], 1 }

</bundles_post_ra>
